<compile_context>
chip_gen: v7x
topology: tpu7x:2x2x1
jax: 0.10.0
libtpu: 0.0.40
codegen_flags: <defaults>
</compile_context>

<pallas_src>
import numpy as np
import jax
import jax.numpy as jnp
from jax.experimental import pallas as pl
from jax.experimental.pallas import tpu as pltpu


# ------------------------------ parameters ---------------------------------

def init_params(key):
    ks = jax.random.split(key, 10)
    p = {}
    p["conv1_w"] = 0.05 * jax.random.normal(ks[0], (6, 1, 3, 3), jnp.float32)
    p["conv1_b"] = 0.05 * jax.random.normal(ks[1], (6,), jnp.float32)
    p["conv2_w"] = 0.05 * jax.random.normal(ks[2], (16, 6, 5, 5), jnp.float32)
    p["conv2_b"] = 0.05 * jax.random.normal(ks[3], (16,), jnp.float32)
    p["fc1_w"] = 0.05 * jax.random.normal(ks[4], (120, 400), jnp.float32)
    p["fc1_b"] = 0.05 * jax.random.normal(ks[5], (120,), jnp.float32)
    p["fc2_w"] = 0.05 * jax.random.normal(ks[6], (84, 120), jnp.float32)
    p["fc2_b"] = 0.05 * jax.random.normal(ks[7], (84,), jnp.float32)
    p["fc3_w"] = 0.05 * jax.random.normal(ks[8], (10, 84), jnp.float32)
    p["fc3_b"] = 0.05 * jax.random.normal(ks[9], (10,), jnp.float32)
    return p


def prepare_params(params):
    """One-time (host-side) preprocessing of the torch-layout parameters into
    matmul-ready constants.  Nothing here runs in the per-step hot path."""
    w1 = np.asarray(params["conv1_w"], np.float32)   # (6,1,3,3)
    b1 = np.asarray(params["conv1_b"], np.float32)   # (6,)
    w2 = np.asarray(params["conv2_w"], np.float32)   # (16,6,5,5)
    b2 = np.asarray(params["conv2_b"], np.float32)   # (16,)
    fw1 = np.asarray(params["fc1_w"], np.float32)    # (120,400)
    fb1 = np.asarray(params["fc1_b"], np.float32)
    fw2 = np.asarray(params["fc2_w"], np.float32)    # (84,120)
    fb2 = np.asarray(params["fc2_b"], np.float32)
    fw3 = np.asarray(params["fc3_w"], np.float32)    # (10,84)
    fb3 = np.asarray(params["fc3_b"], np.float32)

    # conv1 (1->6, 3x3, pad=1) as banded matrices over the padded 30x30 image.
    # Result column layout: col = c*28 + x   (c = out channel, x = out column)
    T1 = np.zeros((3, 30, 6 * 28), np.float32)
    for dy in range(3):
        for c in range(6):
            for x in range(28):
                for dx in range(3):
                    T1[dy, x + dx, c * 28 + x] = w1[c, 0, dy, dx]

    # 2x2/2 max-pool selectors for layer1 (W-selector block-diag per channel).
    PW1 = np.zeros((2, 6 * 28, 6 * 14), np.float32)
    for px in range(2):
        for c in range(6):
            for X in range(14):
                PW1[px, c * 28 + 2 * X + px, c * 14 + X] = 1.0
    PH1 = np.zeros((2, 14, 28), np.float32)
    for py in range(2):
        for Y in range(14):
            PH1[py, Y, 2 * Y + py] = 1.0
    B1 = np.repeat(b1, 14)[None, :].astype(np.float32)        # (1, 84) col=c*14+X

    # conv2 (6->16, 5x5, no pad) as banded matrices over the (14, 6*14) layer-1
    # output.  Result column layout: col = o*10 + x.
    T2 = np.zeros((5, 6 * 14, 16 * 10), np.float32)
    for dy in range(5):
        for o in range(16):
            for ci in range(6):
                for x in range(10):
                    for dx in range(5):
                        T2[dy, ci * 14 + x + dx, o * 10 + x] = w2[o, ci, dy, dx]

    PW2 = np.zeros((2, 16 * 10, 16 * 5), np.float32)
    for px in range(2):
        for o in range(16):
            for X in range(5):
                PW2[px, o * 10 + 2 * X + px, o * 5 + X] = 1.0
    PH2 = np.zeros((2, 5, 10), np.float32)
    for py in range(2):
        for Y in range(5):
            PH2[py, Y, 2 * Y + py] = 1.0
    B2 = np.repeat(b2, 5)[None, :].astype(np.float32)         # (1, 80) col=o*5+X

    # fc1: torch flattens NCHW (B,16,5,5) -> feature f = o*25 + Y*5 + X.
    # Fold that permutation into the weight; pad out dim 120 -> 128 (lane-dense).
    W1r = np.zeros((5, 16 * 5, 128), np.float32)
    for Y in range(5):
        for o in range(16):
            for X in range(5):
                W1r[Y, o * 5 + X, :120] = fw1[:, o * 25 + Y * 5 + X]
    BF1 = np.zeros((1, 128), np.float32); BF1[0, :120] = fb1

    W2fc = np.zeros((128, 128), np.float32); W2fc[:120, :84] = fw2.T
    BF2 = np.zeros((1, 128), np.float32); BF2[0, :84] = fb2
    W3fc = np.zeros((128, 128), np.float32); W3fc[:84, :10] = fw3.T
    BF3 = np.zeros((1, 128), np.float32); BF3[0, :10] = fb3

    prep = dict(t1=T1, pw1=PW1, ph1=PH1, b1=B1,
                t2=T2, pw2=PW2, ph2=PH2, b2=B2,
                w1r=W1r, bf1=BF1, w2fc=W2fc, bf2=BF2, w3fc=W3fc, bf3=BF3)
    return {k: jnp.asarray(v) for k, v in prep.items()}


_PREP_ORDER = ("t1", "pw1", "ph1", "b1", "t2", "pw2", "ph2", "b2",
               "w1r", "bf1", "w2fc", "bf2", "w3fc", "bf3")


# ------------------------------ fused kernel --------------------------------

def _lenet_kernel(x_ref, t1_ref, pw1_ref, ph1_ref, b1_ref,
                  t2_ref, pw2_ref, ph2_ref, b2_ref,
                  w1r_ref, bf1_ref, w2fc_ref, bf2_ref, w3fc_ref, bf3_ref,
                  out_ref):
    f32 = jnp.float32
    xp = x_ref[0]                                      # (30, 30) padded image

    # ---- layer1: Conv2d(1,6,3,pad=1) via banded matmuls + fused 2x2 maxpool
    c1 = jnp.dot(xp[0:28, :], t1_ref[0], preferred_element_type=f32)
    for dy in range(1, 3):
        c1 = c1 + jnp.dot(xp[dy:dy + 28, :], t1_ref[dy],
                          preferred_element_type=f32)   # (28, 6*28)
    cw0 = jnp.dot(c1, pw1_ref[0], preferred_element_type=f32)   # even columns
    cw1 = jnp.dot(c1, pw1_ref[1], preferred_element_type=f32)   # odd columns
    p1 = jnp.maximum(
        jnp.maximum(jnp.dot(ph1_ref[0], cw0, preferred_element_type=f32),
                    jnp.dot(ph1_ref[0], cw1, preferred_element_type=f32)),
        jnp.maximum(jnp.dot(ph1_ref[1], cw0, preferred_element_type=f32),
                    jnp.dot(ph1_ref[1], cw1, preferred_element_type=f32)))
    p1 = p1 + b1_ref[...]                              # (14, 6*14), col=c*14+X

    # ---- layer2: Conv2d(6,16,5) via banded matmuls + fused 2x2 maxpool
    c2 = jnp.dot(p1[0:10, :], t2_ref[0], preferred_element_type=f32)
    for dy in range(1, 5):
        c2 = c2 + jnp.dot(p1[dy:dy + 10, :], t2_ref[dy],
                          preferred_element_type=f32)   # (10, 16*10)
    dw0 = jnp.dot(c2, pw2_ref[0], preferred_element_type=f32)
    dw1 = jnp.dot(c2, pw2_ref[1], preferred_element_type=f32)
    p2 = jnp.maximum(
        jnp.maximum(jnp.dot(ph2_ref[0], dw0, preferred_element_type=f32),
                    jnp.dot(ph2_ref[0], dw1, preferred_element_type=f32)),
        jnp.maximum(jnp.dot(ph2_ref[1], dw0, preferred_element_type=f32),
                    jnp.dot(ph2_ref[1], dw1, preferred_element_type=f32)))
    p2 = p2 + b2_ref[...]                              # (5, 16*5), col=o*5+X

    # ---- layer3: fc1 (torch flatten folded into w1r) -> fc2 -> fc3, N padded
    #      to 128 so every intermediate / the final store is lane-dense.
    h = bf1_ref[...]                                   # (1, 128)
    for y in range(5):
        h = h + jnp.dot(p2[y:y + 1, :], w1r_ref[y], preferred_element_type=f32)
    h = jnp.dot(h, w2fc_ref[...], preferred_element_type=f32) + bf2_ref[...]
    h = jnp.dot(h, w3fc_ref[...], preferred_element_type=f32) + bf3_ref[...]
    out_ref[0] = h                                     # logits live in [:, :10]


# ------------------------------ forward wrapper -----------------------------

def lenet_forward(prep, x_nchw):
    """x_nchw: (B, 1, 28, 28) -> logits (B, 10)."""
    B = x_nchw.shape[0]
    # 1-pixel zero-pad for conv1 (padding=1) -- the only op outside the kernel.
    xp = jnp.pad(x_nchw[:, 0, :, :].astype(jnp.float32),
                 ((0, 0), (1, 1), (1, 1)))              # (B, 30, 30)

    weights = [prep[k] for k in _PREP_ORDER]

    def _resident(a):
        # Whole array in VMEM, same block every grid step (stays resident).
        return pl.BlockSpec(a.shape, lambda b, _nd=a.ndim: (0,) * _nd)

    out = pl.pallas_call(
        _lenet_kernel,
        out_shape=jax.ShapeDtypeStruct((B, 1, 128), jnp.float32),
        grid=(B,),
        in_specs=[pl.BlockSpec((1, 30, 30), lambda b: (b, 0, 0))]
                 + [_resident(a) for a in weights],
        out_specs=pl.BlockSpec((1, 1, 128), lambda b: (b, 0, 0)),
        compiler_params=pltpu.CompilerParams(
            dimension_semantics=("parallel",)),   # v7x: 2 TCs split the batch
    )(xp, *weights)
    return out[:, 0, :10]


# ----------------------------------- main ------------------------------------

if __name__ == "__main__":
    key = jax.random.PRNGKey(0)
    k_param, k_x = jax.random.split(key)
    params = init_params(k_param)
    prep = prepare_params(params)          # one-time weight preprocessing

    # LeNet's 400-feature flatten implies a 1x28x28 input; batch = 2.
    x = jax.random.normal(k_x, (2, 1, 28, 28), jnp.float32)

    fwd = jax.jit(lenet_forward)
    y = fwd(prep, x)
    jax.block_until_ready(y)
    assert y.shape == (2, 10)
    print("KERNEL_OK")
</pallas_src>

<mosaic_0001>
module attributes {stable_mosaic.version = 11 : i64} {
  func.func @_lenet_kernel(%arg0: i32, %arg1: memref<1x30x30xf32, #tpu.memory_space<vmem>>, %arg2: memref<3x30x168xf32, #tpu.memory_space<vmem>>, %arg3: memref<2x168x84xf32, #tpu.memory_space<vmem>>, %arg4: memref<2x14x28xf32, #tpu.memory_space<vmem>>, %arg5: memref<1x84xf32, #tpu.memory_space<vmem>>, %arg6: memref<5x84x160xf32, #tpu.memory_space<vmem>>, %arg7: memref<2x160x80xf32, #tpu.memory_space<vmem>>, %arg8: memref<2x5x10xf32, #tpu.memory_space<vmem>>, %arg9: memref<1x80xf32, #tpu.memory_space<vmem>>, %arg10: memref<5x80x128xf32, #tpu.memory_space<vmem>>, %arg11: memref<1x128xf32, #tpu.memory_space<vmem>>, %arg12: memref<128x128xf32, #tpu.memory_space<vmem>>, %arg13: memref<1x128xf32, #tpu.memory_space<vmem>>, %arg14: memref<128x128xf32, #tpu.memory_space<vmem>>, %arg15: memref<1x128xf32, #tpu.memory_space<vmem>>, %arg16: memref<1x1x128xf32, #tpu.memory_space<vmem>>) attributes {dimension_semantics = [#tpu.dimension_semantics<parallel>], iteration_bounds = array<i64: 2>, scalar_prefetch = 0 : i64, scratch_operands = 0 : i64, tpu.core_type = #tpu.core_type<tc>, window_params = [{transform_indices = @transform_0, window_bounds = array<i64: 1, 30, 30>}, {pipeline_mode = #tpu.pipeline_mode<synchronous>, transform_indices = @transform_1, window_bounds = array<i64: 3, 30, 168>}, {pipeline_mode = #tpu.pipeline_mode<synchronous>, transform_indices = @transform_2, window_bounds = array<i64: 2, 168, 84>}, {pipeline_mode = #tpu.pipeline_mode<synchronous>, transform_indices = @transform_3, window_bounds = array<i64: 2, 14, 28>}, {pipeline_mode = #tpu.pipeline_mode<synchronous>, transform_indices = @transform_4, window_bounds = array<i64: 1, 84>}, {pipeline_mode = #tpu.pipeline_mode<synchronous>, transform_indices = @transform_5, window_bounds = array<i64: 5, 84, 160>}, {pipeline_mode = #tpu.pipeline_mode<synchronous>, transform_indices = @transform_6, window_bounds = array<i64: 2, 160, 80>}, {pipeline_mode = #tpu.pipeline_mode<synchronous>, transform_indices = @transform_7, window_bounds = array<i64: 2, 5, 10>}, {pipeline_mode = #tpu.pipeline_mode<synchronous>, transform_indices = @transform_8, window_bounds = array<i64: 1, 80>}, {pipeline_mode = #tpu.pipeline_mode<synchronous>, transform_indices = @transform_9, window_bounds = array<i64: 5, 80, 128>}, {pipeline_mode = #tpu.pipeline_mode<synchronous>, transform_indices = @transform_10, window_bounds = array<i64: 1, 128>}, {pipeline_mode = #tpu.pipeline_mode<synchronous>, transform_indices = @transform_11, window_bounds = array<i64: 128, 128>}, {pipeline_mode = #tpu.pipeline_mode<synchronous>, transform_indices = @transform_12, window_bounds = array<i64: 1, 128>}, {pipeline_mode = #tpu.pipeline_mode<synchronous>, transform_indices = @transform_13, window_bounds = array<i64: 128, 128>}, {pipeline_mode = #tpu.pipeline_mode<synchronous>, transform_indices = @transform_14, window_bounds = array<i64: 1, 128>}, {transform_indices = @transform_15, window_bounds = array<i64: 1, 1, 128>}]} {
    %c0 = arith.constant 0 : index
    %c0_0 = arith.constant 0 : index
    %c0_1 = arith.constant 0 : index
    %0 = vector.load %arg1[%c0, %c0_0, %c0_1] : memref<1x30x30xf32, #tpu.memory_space<vmem>>, vector<1x30x30xf32>
    %1 = vector.shape_cast %0 : vector<1x30x30xf32> to vector<30x30xf32>
    %2 = vector.extract_strided_slice %1 {offsets = [0, 0], sizes = [28, 30], strides = [1, 1]} : vector<30x30xf32> to vector<28x30xf32>
    %c0_2 = arith.constant 0 : index
    %c0_3 = arith.constant 0 : index
    %c0_4 = arith.constant 0 : index
    %3 = vector.load %arg2[%c0_2, %c0_3, %c0_4] : memref<3x30x168xf32, #tpu.memory_space<vmem>>, vector<1x30x168xf32>
    %4 = vector.shape_cast %3 : vector<1x30x168xf32> to vector<30x168xf32>
    %cst = arith.constant dense<0.000000e+00> : vector<28x168xf32>
    %5 = tpu.matmul %2, %4, %cst {dimension_numbers = #tpu.dot_dimension_numbers<[1], [0], [0], [1], [0, 0, 1, 1], [], []>} : vector<28x30xf32>, vector<30x168xf32>, vector<28x168xf32> -> vector<28x168xf32>
    %6 = vector.extract_strided_slice %1 {offsets = [1, 0], sizes = [28, 30], strides = [1, 1]} : vector<30x30xf32> to vector<28x30xf32>
    %c1 = arith.constant 1 : index
    %c0_5 = arith.constant 0 : index
    %c0_6 = arith.constant 0 : index
    %7 = vector.load %arg2[%c1, %c0_5, %c0_6] : memref<3x30x168xf32, #tpu.memory_space<vmem>>, vector<1x30x168xf32>
    %8 = vector.shape_cast %7 : vector<1x30x168xf32> to vector<30x168xf32>
    %cst_7 = arith.constant dense<0.000000e+00> : vector<28x168xf32>
    %9 = tpu.matmul %6, %8, %cst_7 {dimension_numbers = #tpu.dot_dimension_numbers<[1], [0], [0], [1], [0, 0, 1, 1], [], []>} : vector<28x30xf32>, vector<30x168xf32>, vector<28x168xf32> -> vector<28x168xf32>
    %10 = arith.addf %5, %9 : vector<28x168xf32>
    %11 = vector.extract_strided_slice %1 {offsets = [2, 0], sizes = [28, 30], strides = [1, 1]} : vector<30x30xf32> to vector<28x30xf32>
    %c2 = arith.constant 2 : index
    %c0_8 = arith.constant 0 : index
    %c0_9 = arith.constant 0 : index
    %12 = vector.load %arg2[%c2, %c0_8, %c0_9] : memref<3x30x168xf32, #tpu.memory_space<vmem>>, vector<1x30x168xf32>
    %13 = vector.shape_cast %12 : vector<1x30x168xf32> to vector<30x168xf32>
    %cst_10 = arith.constant dense<0.000000e+00> : vector<28x168xf32>
    %14 = tpu.matmul %11, %13, %cst_10 {dimension_numbers = #tpu.dot_dimension_numbers<[1], [0], [0], [1], [0, 0, 1, 1], [], []>} : vector<28x30xf32>, vector<30x168xf32>, vector<28x168xf32> -> vector<28x168xf32>
    %15 = arith.addf %10, %14 : vector<28x168xf32>
    %c0_11 = arith.constant 0 : index
    %c0_12 = arith.constant 0 : index
    %c0_13 = arith.constant 0 : index
    %16 = vector.load %arg3[%c0_11, %c0_12, %c0_13] : memref<2x168x84xf32, #tpu.memory_space<vmem>>, vector<1x168x84xf32>
    %17 = vector.shape_cast %16 : vector<1x168x84xf32> to vector<168x84xf32>
    %cst_14 = arith.constant dense<0.000000e+00> : vector<28x84xf32>
    %18 = tpu.matmul %15, %17, %cst_14 {dimension_numbers = #tpu.dot_dimension_numbers<[1], [0], [0], [1], [0, 0, 1, 1], [], []>} : vector<28x168xf32>, vector<168x84xf32>, vector<28x84xf32> -> vector<28x84xf32>
    %c1_15 = arith.constant 1 : index
    %c0_16 = arith.constant 0 : index
    %c0_17 = arith.constant 0 : index
    %19 = vector.load %arg3[%c1_15, %c0_16, %c0_17] : memref<2x168x84xf32, #tpu.memory_space<vmem>>, vector<1x168x84xf32>
    %20 = vector.shape_cast %19 : vector<1x168x84xf32> to vector<168x84xf32>
    %cst_18 = arith.constant dense<0.000000e+00> : vector<28x84xf32>
    %21 = tpu.matmul %15, %20, %cst_18 {dimension_numbers = #tpu.dot_dimension_numbers<[1], [0], [0], [1], [0, 0, 1, 1], [], []>} : vector<28x168xf32>, vector<168x84xf32>, vector<28x84xf32> -> vector<28x84xf32>
    %c0_19 = arith.constant 0 : index
    %c0_20 = arith.constant 0 : index
    %c0_21 = arith.constant 0 : index
    %22 = vector.load %arg4[%c0_19, %c0_20, %c0_21] : memref<2x14x28xf32, #tpu.memory_space<vmem>>, vector<1x14x28xf32>
    %23 = vector.shape_cast %22 : vector<1x14x28xf32> to vector<14x28xf32>
    %cst_22 = arith.constant dense<0.000000e+00> : vector<14x84xf32>
    %24 = tpu.matmul %23, %18, %cst_22 {dimension_numbers = #tpu.dot_dimension_numbers<[1], [0], [0], [1], [0, 0, 1, 1], [], []>} : vector<14x28xf32>, vector<28x84xf32>, vector<14x84xf32> -> vector<14x84xf32>
    %c0_23 = arith.constant 0 : index
    %c0_24 = arith.constant 0 : index
    %c0_25 = arith.constant 0 : index
    %25 = vector.load %arg4[%c0_23, %c0_24, %c0_25] : memref<2x14x28xf32, #tpu.memory_space<vmem>>, vector<1x14x28xf32>
    %26 = vector.shape_cast %25 : vector<1x14x28xf32> to vector<14x28xf32>
    %cst_26 = arith.constant dense<0.000000e+00> : vector<14x84xf32>
    %27 = tpu.matmul %26, %21, %cst_26 {dimension_numbers = #tpu.dot_dimension_numbers<[1], [0], [0], [1], [0, 0, 1, 1], [], []>} : vector<14x28xf32>, vector<28x84xf32>, vector<14x84xf32> -> vector<14x84xf32>
    %28 = arith.maximumf %24, %27 : vector<14x84xf32>
    %c1_27 = arith.constant 1 : index
    %c0_28 = arith.constant 0 : index
    %c0_29 = arith.constant 0 : index
    %29 = vector.load %arg4[%c1_27, %c0_28, %c0_29] : memref<2x14x28xf32, #tpu.memory_space<vmem>>, vector<1x14x28xf32>
    %30 = vector.shape_cast %29 : vector<1x14x28xf32> to vector<14x28xf32>
    %cst_30 = arith.constant dense<0.000000e+00> : vector<14x84xf32>
    %31 = tpu.matmul %30, %18, %cst_30 {dimension_numbers = #tpu.dot_dimension_numbers<[1], [0], [0], [1], [0, 0, 1, 1], [], []>} : vector<14x28xf32>, vector<28x84xf32>, vector<14x84xf32> -> vector<14x84xf32>
    %c1_31 = arith.constant 1 : index
    %c0_32 = arith.constant 0 : index
    %c0_33 = arith.constant 0 : index
    %32 = vector.load %arg4[%c1_31, %c0_32, %c0_33] : memref<2x14x28xf32, #tpu.memory_space<vmem>>, vector<1x14x28xf32>
    %33 = vector.shape_cast %32 : vector<1x14x28xf32> to vector<14x28xf32>
    %cst_34 = arith.constant dense<0.000000e+00> : vector<14x84xf32>
    %34 = tpu.matmul %33, %21, %cst_34 {dimension_numbers = #tpu.dot_dimension_numbers<[1], [0], [0], [1], [0, 0, 1, 1], [], []>} : vector<14x28xf32>, vector<28x84xf32>, vector<14x84xf32> -> vector<14x84xf32>
    %35 = arith.maximumf %31, %34 : vector<14x84xf32>
    %36 = arith.maximumf %28, %35 : vector<14x84xf32>
    %c0_35 = arith.constant 0 : index
    %c0_36 = arith.constant 0 : index
    %37 = vector.load %arg5[%c0_35, %c0_36] : memref<1x84xf32, #tpu.memory_space<vmem>>, vector<1x84xf32>
    %38 = vector.broadcast %37 : vector<1x84xf32> to vector<14x84xf32>
    %39 = arith.addf %36, %38 : vector<14x84xf32>
    %40 = vector.extract_strided_slice %39 {offsets = [0, 0], sizes = [10, 84], strides = [1, 1]} : vector<14x84xf32> to vector<10x84xf32>
    %c0_37 = arith.constant 0 : index
    %c0_38 = arith.constant 0 : index
    %c0_39 = arith.constant 0 : index
    %41 = vector.load %arg6[%c0_37, %c0_38, %c0_39] : memref<5x84x160xf32, #tpu.memory_space<vmem>>, vector<1x84x160xf32>
    %42 = vector.shape_cast %41 : vector<1x84x160xf32> to vector<84x160xf32>
    %cst_40 = arith.constant dense<0.000000e+00> : vector<10x160xf32>
    %43 = tpu.matmul %40, %42, %cst_40 {dimension_numbers = #tpu.dot_dimension_numbers<[1], [0], [0], [1], [0, 0, 1, 1], [], []>} : vector<10x84xf32>, vector<84x160xf32>, vector<10x160xf32> -> vector<10x160xf32>
    %44 = vector.extract_strided_slice %39 {offsets = [1, 0], sizes = [10, 84], strides = [1, 1]} : vector<14x84xf32> to vector<10x84xf32>
    %c1_41 = arith.constant 1 : index
    %c0_42 = arith.constant 0 : index
    %c0_43 = arith.constant 0 : index
    %45 = vector.load %arg6[%c1_41, %c0_42, %c0_43] : memref<5x84x160xf32, #tpu.memory_space<vmem>>, vector<1x84x160xf32>
    %46 = vector.shape_cast %45 : vector<1x84x160xf32> to vector<84x160xf32>
    %cst_44 = arith.constant dense<0.000000e+00> : vector<10x160xf32>
    %47 = tpu.matmul %44, %46, %cst_44 {dimension_numbers = #tpu.dot_dimension_numbers<[1], [0], [0], [1], [0, 0, 1, 1], [], []>} : vector<10x84xf32>, vector<84x160xf32>, vector<10x160xf32> -> vector<10x160xf32>
    %48 = arith.addf %43, %47 : vector<10x160xf32>
    %49 = vector.extract_strided_slice %39 {offsets = [2, 0], sizes = [10, 84], strides = [1, 1]} : vector<14x84xf32> to vector<10x84xf32>
    %c2_45 = arith.constant 2 : index
    %c0_46 = arith.constant 0 : index
    %c0_47 = arith.constant 0 : index
    %50 = vector.load %arg6[%c2_45, %c0_46, %c0_47] : memref<5x84x160xf32, #tpu.memory_space<vmem>>, vector<1x84x160xf32>
    %51 = vector.shape_cast %50 : vector<1x84x160xf32> to vector<84x160xf32>
    %cst_48 = arith.constant dense<0.000000e+00> : vector<10x160xf32>
    %52 = tpu.matmul %49, %51, %cst_48 {dimension_numbers = #tpu.dot_dimension_numbers<[1], [0], [0], [1], [0, 0, 1, 1], [], []>} : vector<10x84xf32>, vector<84x160xf32>, vector<10x160xf32> -> vector<10x160xf32>
    %53 = arith.addf %48, %52 : vector<10x160xf32>
    %54 = vector.extract_strided_slice %39 {offsets = [3, 0], sizes = [10, 84], strides = [1, 1]} : vector<14x84xf32> to vector<10x84xf32>
    %c3 = arith.constant 3 : index
    %c0_49 = arith.constant 0 : index
    %c0_50 = arith.constant 0 : index
    %55 = vector.load %arg6[%c3, %c0_49, %c0_50] : memref<5x84x160xf32, #tpu.memory_space<vmem>>, vector<1x84x160xf32>
    %56 = vector.shape_cast %55 : vector<1x84x160xf32> to vector<84x160xf32>
    %cst_51 = arith.constant dense<0.000000e+00> : vector<10x160xf32>
    %57 = tpu.matmul %54, %56, %cst_51 {dimension_numbers = #tpu.dot_dimension_numbers<[1], [0], [0], [1], [0, 0, 1, 1], [], []>} : vector<10x84xf32>, vector<84x160xf32>, vector<10x160xf32> -> vector<10x160xf32>
    %58 = arith.addf %53, %57 : vector<10x160xf32>
    %59 = vector.extract_strided_slice %39 {offsets = [4, 0], sizes = [10, 84], strides = [1, 1]} : vector<14x84xf32> to vector<10x84xf32>
    %c4 = arith.constant 4 : index
    %c0_52 = arith.constant 0 : index
    %c0_53 = arith.constant 0 : index
    %60 = vector.load %arg6[%c4, %c0_52, %c0_53] : memref<5x84x160xf32, #tpu.memory_space<vmem>>, vector<1x84x160xf32>
    %61 = vector.shape_cast %60 : vector<1x84x160xf32> to vector<84x160xf32>
    %cst_54 = arith.constant dense<0.000000e+00> : vector<10x160xf32>
    %62 = tpu.matmul %59, %61, %cst_54 {dimension_numbers = #tpu.dot_dimension_numbers<[1], [0], [0], [1], [0, 0, 1, 1], [], []>} : vector<10x84xf32>, vector<84x160xf32>, vector<10x160xf32> -> vector<10x160xf32>
    %63 = arith.addf %58, %62 : vector<10x160xf32>
    %c0_55 = arith.constant 0 : index
    %c0_56 = arith.constant 0 : index
    %c0_57 = arith.constant 0 : index
    %64 = vector.load %arg7[%c0_55, %c0_56, %c0_57] : memref<2x160x80xf32, #tpu.memory_space<vmem>>, vector<1x160x80xf32>
    %65 = vector.shape_cast %64 : vector<1x160x80xf32> to vector<160x80xf32>
    %cst_58 = arith.constant dense<0.000000e+00> : vector<10x80xf32>
    %66 = tpu.matmul %63, %65, %cst_58 {dimension_numbers = #tpu.dot_dimension_numbers<[1], [0], [0], [1], [0, 0, 1, 1], [], []>} : vector<10x160xf32>, vector<160x80xf32>, vector<10x80xf32> -> vector<10x80xf32>
    %c1_59 = arith.constant 1 : index
    %c0_60 = arith.constant 0 : index
    %c0_61 = arith.constant 0 : index
    %67 = vector.load %arg7[%c1_59, %c0_60, %c0_61] : memref<2x160x80xf32, #tpu.memory_space<vmem>>, vector<1x160x80xf32>
    %68 = vector.shape_cast %67 : vector<1x160x80xf32> to vector<160x80xf32>
    %cst_62 = arith.constant dense<0.000000e+00> : vector<10x80xf32>
    %69 = tpu.matmul %63, %68, %cst_62 {dimension_numbers = #tpu.dot_dimension_numbers<[1], [0], [0], [1], [0, 0, 1, 1], [], []>} : vector<10x160xf32>, vector<160x80xf32>, vector<10x80xf32> -> vector<10x80xf32>
    %c0_63 = arith.constant 0 : index
    %c0_64 = arith.constant 0 : index
    %c0_65 = arith.constant 0 : index
    %70 = vector.load %arg8[%c0_63, %c0_64, %c0_65] : memref<2x5x10xf32, #tpu.memory_space<vmem>>, vector<1x5x10xf32>
    %71 = vector.shape_cast %70 : vector<1x5x10xf32> to vector<5x10xf32>
    %cst_66 = arith.constant dense<0.000000e+00> : vector<5x80xf32>
    %72 = tpu.matmul %71, %66, %cst_66 {dimension_numbers = #tpu.dot_dimension_numbers<[1], [0], [0], [1], [0, 0, 1, 1], [], []>} : vector<5x10xf32>, vector<10x80xf32>, vector<5x80xf32> -> vector<5x80xf32>
    %c0_67 = arith.constant 0 : index
    %c0_68 = arith.constant 0 : index
    %c0_69 = arith.constant 0 : index
    %73 = vector.load %arg8[%c0_67, %c0_68, %c0_69] : memref<2x5x10xf32, #tpu.memory_space<vmem>>, vector<1x5x10xf32>
    %74 = vector.shape_cast %73 : vector<1x5x10xf32> to vector<5x10xf32>
    %cst_70 = arith.constant dense<0.000000e+00> : vector<5x80xf32>
    %75 = tpu.matmul %74, %69, %cst_70 {dimension_numbers = #tpu.dot_dimension_numbers<[1], [0], [0], [1], [0, 0, 1, 1], [], []>} : vector<5x10xf32>, vector<10x80xf32>, vector<5x80xf32> -> vector<5x80xf32>
    %76 = arith.maximumf %72, %75 : vector<5x80xf32>
    %c1_71 = arith.constant 1 : index
    %c0_72 = arith.constant 0 : index
    %c0_73 = arith.constant 0 : index
    %77 = vector.load %arg8[%c1_71, %c0_72, %c0_73] : memref<2x5x10xf32, #tpu.memory_space<vmem>>, vector<1x5x10xf32>
    %78 = vector.shape_cast %77 : vector<1x5x10xf32> to vector<5x10xf32>
    %cst_74 = arith.constant dense<0.000000e+00> : vector<5x80xf32>
    %79 = tpu.matmul %78, %66, %cst_74 {dimension_numbers = #tpu.dot_dimension_numbers<[1], [0], [0], [1], [0, 0, 1, 1], [], []>} : vector<5x10xf32>, vector<10x80xf32>, vector<5x80xf32> -> vector<5x80xf32>
    %c1_75 = arith.constant 1 : index
    %c0_76 = arith.constant 0 : index
    %c0_77 = arith.constant 0 : index
    %80 = vector.load %arg8[%c1_75, %c0_76, %c0_77] : memref<2x5x10xf32, #tpu.memory_space<vmem>>, vector<1x5x10xf32>
    %81 = vector.shape_cast %80 : vector<1x5x10xf32> to vector<5x10xf32>
    %cst_78 = arith.constant dense<0.000000e+00> : vector<5x80xf32>
    %82 = tpu.matmul %81, %69, %cst_78 {dimension_numbers = #tpu.dot_dimension_numbers<[1], [0], [0], [1], [0, 0, 1, 1], [], []>} : vector<5x10xf32>, vector<10x80xf32>, vector<5x80xf32> -> vector<5x80xf32>
    %83 = arith.maximumf %79, %82 : vector<5x80xf32>
    %84 = arith.maximumf %76, %83 : vector<5x80xf32>
    %c0_79 = arith.constant 0 : index
    %c0_80 = arith.constant 0 : index
    %85 = vector.load %arg9[%c0_79, %c0_80] : memref<1x80xf32, #tpu.memory_space<vmem>>, vector<1x80xf32>
    %86 = vector.broadcast %85 : vector<1x80xf32> to vector<5x80xf32>
    %87 = arith.addf %84, %86 : vector<5x80xf32>
    %c0_81 = arith.constant 0 : index
    %c0_82 = arith.constant 0 : index
    %88 = vector.load %arg11[%c0_81, %c0_82] : memref<1x128xf32, #tpu.memory_space<vmem>>, vector<1x128xf32>
    %89 = vector.extract_strided_slice %87 {offsets = [0, 0], sizes = [1, 80], strides = [1, 1]} : vector<5x80xf32> to vector<1x80xf32>
    %c0_83 = arith.constant 0 : index
    %c0_84 = arith.constant 0 : index
    %c0_85 = arith.constant 0 : index
    %90 = vector.load %arg10[%c0_83, %c0_84, %c0_85] : memref<5x80x128xf32, #tpu.memory_space<vmem>>, vector<1x80x128xf32>
    %91 = vector.shape_cast %90 : vector<1x80x128xf32> to vector<80x128xf32>
    %cst_86 = arith.constant dense<0.000000e+00> : vector<1x128xf32>
    %92 = tpu.matmul %89, %91, %cst_86 {dimension_numbers = #tpu.dot_dimension_numbers<[1], [0], [0], [1], [0, 0, 1, 1], [], []>} : vector<1x80xf32>, vector<80x128xf32>, vector<1x128xf32> -> vector<1x128xf32>
    %93 = arith.addf %88, %92 : vector<1x128xf32>
    %94 = vector.extract_strided_slice %87 {offsets = [1, 0], sizes = [1, 80], strides = [1, 1]} : vector<5x80xf32> to vector<1x80xf32>
    %c1_87 = arith.constant 1 : index
    %c0_88 = arith.constant 0 : index
    %c0_89 = arith.constant 0 : index
    %95 = vector.load %arg10[%c1_87, %c0_88, %c0_89] : memref<5x80x128xf32, #tpu.memory_space<vmem>>, vector<1x80x128xf32>
    %96 = vector.shape_cast %95 : vector<1x80x128xf32> to vector<80x128xf32>
    %cst_90 = arith.constant dense<0.000000e+00> : vector<1x128xf32>
    %97 = tpu.matmul %94, %96, %cst_90 {dimension_numbers = #tpu.dot_dimension_numbers<[1], [0], [0], [1], [0, 0, 1, 1], [], []>} : vector<1x80xf32>, vector<80x128xf32>, vector<1x128xf32> -> vector<1x128xf32>
    %98 = arith.addf %93, %97 : vector<1x128xf32>
    %99 = vector.extract_strided_slice %87 {offsets = [2, 0], sizes = [1, 80], strides = [1, 1]} : vector<5x80xf32> to vector<1x80xf32>
    %c2_91 = arith.constant 2 : index
    %c0_92 = arith.constant 0 : index
    %c0_93 = arith.constant 0 : index
    %100 = vector.load %arg10[%c2_91, %c0_92, %c0_93] : memref<5x80x128xf32, #tpu.memory_space<vmem>>, vector<1x80x128xf32>
    %101 = vector.shape_cast %100 : vector<1x80x128xf32> to vector<80x128xf32>
    %cst_94 = arith.constant dense<0.000000e+00> : vector<1x128xf32>
    %102 = tpu.matmul %99, %101, %cst_94 {dimension_numbers = #tpu.dot_dimension_numbers<[1], [0], [0], [1], [0, 0, 1, 1], [], []>} : vector<1x80xf32>, vector<80x128xf32>, vector<1x128xf32> -> vector<1x128xf32>
    %103 = arith.addf %98, %102 : vector<1x128xf32>
    %104 = vector.extract_strided_slice %87 {offsets = [3, 0], sizes = [1, 80], strides = [1, 1]} : vector<5x80xf32> to vector<1x80xf32>
    %c3_95 = arith.constant 3 : index
    %c0_96 = arith.constant 0 : index
    %c0_97 = arith.constant 0 : index
    %105 = vector.load %arg10[%c3_95, %c0_96, %c0_97] : memref<5x80x128xf32, #tpu.memory_space<vmem>>, vector<1x80x128xf32>
    %106 = vector.shape_cast %105 : vector<1x80x128xf32> to vector<80x128xf32>
    %cst_98 = arith.constant dense<0.000000e+00> : vector<1x128xf32>
    %107 = tpu.matmul %104, %106, %cst_98 {dimension_numbers = #tpu.dot_dimension_numbers<[1], [0], [0], [1], [0, 0, 1, 1], [], []>} : vector<1x80xf32>, vector<80x128xf32>, vector<1x128xf32> -> vector<1x128xf32>
    %108 = arith.addf %103, %107 : vector<1x128xf32>
    %109 = vector.extract_strided_slice %87 {offsets = [4, 0], sizes = [1, 80], strides = [1, 1]} : vector<5x80xf32> to vector<1x80xf32>
    %c4_99 = arith.constant 4 : index
    %c0_100 = arith.constant 0 : index
    %c0_101 = arith.constant 0 : index
    %110 = vector.load %arg10[%c4_99, %c0_100, %c0_101] : memref<5x80x128xf32, #tpu.memory_space<vmem>>, vector<1x80x128xf32>
    %111 = vector.shape_cast %110 : vector<1x80x128xf32> to vector<80x128xf32>
    %cst_102 = arith.constant dense<0.000000e+00> : vector<1x128xf32>
    %112 = tpu.matmul %109, %111, %cst_102 {dimension_numbers = #tpu.dot_dimension_numbers<[1], [0], [0], [1], [0, 0, 1, 1], [], []>} : vector<1x80xf32>, vector<80x128xf32>, vector<1x128xf32> -> vector<1x128xf32>
    %113 = arith.addf %108, %112 : vector<1x128xf32>
    %c0_103 = arith.constant 0 : index
    %c0_104 = arith.constant 0 : index
    %114 = vector.load %arg12[%c0_103, %c0_104] : memref<128x128xf32, #tpu.memory_space<vmem>>, vector<128x128xf32>
    %cst_105 = arith.constant dense<0.000000e+00> : vector<1x128xf32>
    %115 = tpu.matmul %113, %114, %cst_105 {dimension_numbers = #tpu.dot_dimension_numbers<[1], [0], [0], [1], [0, 0, 1, 1], [], []>} : vector<1x128xf32>, vector<128x128xf32>, vector<1x128xf32> -> vector<1x128xf32>
    %c0_106 = arith.constant 0 : index
    %c0_107 = arith.constant 0 : index
    %116 = vector.load %arg13[%c0_106, %c0_107] : memref<1x128xf32, #tpu.memory_space<vmem>>, vector<1x128xf32>
    %117 = arith.addf %115, %116 : vector<1x128xf32>
    %c0_108 = arith.constant 0 : index
    %c0_109 = arith.constant 0 : index
    %118 = vector.load %arg14[%c0_108, %c0_109] : memref<128x128xf32, #tpu.memory_space<vmem>>, vector<128x128xf32>
    %cst_110 = arith.constant dense<0.000000e+00> : vector<1x128xf32>
    %119 = tpu.matmul %117, %118, %cst_110 {dimension_numbers = #tpu.dot_dimension_numbers<[1], [0], [0], [1], [0, 0, 1, 1], [], []>} : vector<1x128xf32>, vector<128x128xf32>, vector<1x128xf32> -> vector<1x128xf32>
    %c0_111 = arith.constant 0 : index
    %c0_112 = arith.constant 0 : index
    %120 = vector.load %arg15[%c0_111, %c0_112] : memref<1x128xf32, #tpu.memory_space<vmem>>, vector<1x128xf32>
    %121 = arith.addf %119, %120 : vector<1x128xf32>
    %c0_113 = arith.constant 0 : index
    %c0_114 = arith.constant 0 : index
    %c0_115 = arith.constant 0 : index
    %122 = vector.load %arg16[%c0_113, %c0_114, %c0_115] : memref<1x1x128xf32, #tpu.memory_space<vmem>>, vector<1x1x128xf32>
    %123 = vector.shape_cast %122 : vector<1x1x128xf32> to vector<1x128xf32>
    %124 = vector.shape_cast %121 : vector<1x128xf32> to vector<1x1x128xf32>
    tpu.vector_store %arg16[%c0_113, %c0_114, %c0_115], %124 {strides = array<i32>} : memref<1x1x128xf32, #tpu.memory_space<vmem>>, vector<1x1x128xf32>,
    return
  }
  func.func @transform_0(%arg0: i32) -> (i32, i32, i32) {
    %c0_i32 = arith.constant 0 : i32
    %c0_i32_0 = arith.constant 0 : i32
    %c0_i32_1 = arith.constant 0 : i32
    return %arg0, %c0_i32, %c0_i32_0 : i32, i32, i32
  }
  func.func @transform_1(%arg0: i32) -> (i32, i32, i32) {
    %c0_i32 = arith.constant 0 : i32
    %c0_i32_0 = arith.constant 0 : i32
    %c0_i32_1 = arith.constant 0 : i32
    %c0_i32_2 = arith.constant 0 : i32
    return %c0_i32, %c0_i32_0, %c0_i32_1 : i32, i32, i32
  }
  func.func @transform_2(%arg0: i32) -> (i32, i32, i32) {
    %c0_i32 = arith.constant 0 : i32
    %c0_i32_0 = arith.constant 0 : i32
    %c0_i32_1 = arith.constant 0 : i32
    %c0_i32_2 = arith.constant 0 : i32
    return %c0_i32, %c0_i32_0, %c0_i32_1 : i32, i32, i32
  }
  func.func @transform_3(%arg0: i32) -> (i32, i32, i32) {
    %c0_i32 = arith.constant 0 : i32
    %c0_i32_0 = arith.constant 0 : i32
    %c0_i32_1 = arith.constant 0 : i32
    %c0_i32_2 = arith.constant 0 : i32
    return %c0_i32, %c0_i32_0, %c0_i32_1 : i32, i32, i32
  }
  func.func @transform_4(%arg0: i32) -> (i32, i32) {
    %c0_i32 = arith.constant 0 : i32
    %c0_i32_0 = arith.constant 0 : i32
    %c0_i32_1 = arith.constant 0 : i32
    return %c0_i32, %c0_i32_0 : i32, i32
  }
  func.func @transform_5(%arg0: i32) -> (i32, i32, i32) {
    %c0_i32 = arith.constant 0 : i32
    %c0_i32_0 = arith.constant 0 : i32
    %c0_i32_1 = arith.constant 0 : i32
    %c0_i32_2 = arith.constant 0 : i32
    return %c0_i32, %c0_i32_0, %c0_i32_1 : i32, i32, i32
  }
  func.func @transform_6(%arg0: i32) -> (i32, i32, i32) {
    %c0_i32 = arith.constant 0 : i32
    %c0_i32_0 = arith.constant 0 : i32
    %c0_i32_1 = arith.constant 0 : i32
    %c0_i32_2 = arith.constant 0 : i32
    return %c0_i32, %c0_i32_0, %c0_i32_1 : i32, i32, i32
  }
  func.func @transform_7(%arg0: i32) -> (i32, i32, i32) {
    %c0_i32 = arith.constant 0 : i32
    %c0_i32_0 = arith.constant 0 : i32
    %c0_i32_1 = arith.constant 0 : i32
    %c0_i32_2 = arith.constant 0 : i32
    return %c0_i32, %c0_i32_0, %c0_i32_1 : i32, i32, i32
  }
  func.func @transform_8(%arg0: i32) -> (i32, i32) {
    %c0_i32 = arith.constant 0 : i32
    %c0_i32_0 = arith.constant 0 : i32
    %c0_i32_1 = arith.constant 0 : i32
    return %c0_i32, %c0_i32_0 : i32, i32
  }
  func.func @transform_9(%arg0: i32) -> (i32, i32, i32) {
    %c0_i32 = arith.constant 0 : i32
    %c0_i32_0 = arith.constant 0 : i32
    %c0_i32_1 = arith.constant 0 : i32
    %c0_i32_2 = arith.constant 0 : i32
    return %c0_i32, %c0_i32_0, %c0_i32_1 : i32, i32, i32
  }
  func.func @transform_10(%arg0: i32) -> (i32, i32) {
    %c0_i32 = arith.constant 0 : i32
    %c0_i32_0 = arith.constant 0 : i32
    %c0_i32_1 = arith.constant 0 : i32
    return %c0_i32, %c0_i32_0 : i32, i32
  }
  func.func @transform_11(%arg0: i32) -> (i32, i32) {
    %c0_i32 = arith.constant 0 : i32
    %c0_i32_0 = arith.constant 0 : i32
    %c0_i32_1 = arith.constant 0 : i32
    return %c0_i32, %c0_i32_0 : i32, i32
  }
  func.func @transform_12(%arg0: i32) -> (i32, i32) {
    %c0_i32 = arith.constant 0 : i32
    %c0_i32_0 = arith.constant 0 : i32
    %c0_i32_1 = arith.constant 0 : i32
    return %c0_i32, %c0_i32_0 : i32, i32
  }
  func.func @transform_13(%arg0: i32) -> (i32, i32) {
    %c0_i32 = arith.constant 0 : i32
    %c0_i32_0 = arith.constant 0 : i32
    %c0_i32_1 = arith.constant 0 : i32
    return %c0_i32, %c0_i32_0 : i32, i32
  }
  func.func @transform_14(%arg0: i32) -> (i32, i32) {
    %c0_i32 = arith.constant 0 : i32
    %c0_i32_0 = arith.constant 0 : i32
    %c0_i32_1 = arith.constant 0 : i32
    return %c0_i32, %c0_i32_0 : i32, i32
  }
  func.func @transform_15(%arg0: i32) -> (i32, i32, i32) {
    %c0_i32 = arith.constant 0 : i32
    %c0_i32_0 = arith.constant 0 : i32
    %c0_i32_1 = arith.constant 0 : i32
    return %arg0, %c0_i32, %c0_i32_0 : i32, i32, i32
  }
}

</mosaic_0001>

<bundles_post_ra>
// kernel: lenet_forward.1
= control target key start
LH: loop header
LB: loop body
LE: loop exit
PB: predicated region body
PF: predicated region fallthrough
CT: control target
= control target key end

     0   :  { %s5841_s0 = inlined_call_operand.vmem [shape: f32[2,30,30], index: 0, kind: input, shape index: {}]   ;;  %s5842_s1 = inlined_call_operand.vmem [shape: f32[3,30,168], index: 1, kind: input, shape index: {}]   ;;  %s5843_s2 = inlined_call_operand.vmem [shape: f32[2,168,84], index: 2, kind: input, shape index: {}]   ;;  %s5844_s3 = inlined_call_operand.vmem [shape: f32[2,14,28], index: 3, kind: input, shape index: {}]   ;;  %s5845_s4 = inlined_call_operand.vmem [shape: f32[1,84], index: 4, kind: input, shape index: {}]   ;;  %s5846_s5 = inlined_call_operand.vmem [shape: f32[5,84,160], index: 5, kind: input, shape index: {}]   ;;  %s5847_s6 = inlined_call_operand.vmem [shape: f32[2,160,80], index: 6, kind: input, shape index: {}]   ;;  %s5848_s7 = inlined_call_operand.vmem [shape: f32[2,5,10], index: 7, kind: input, shape index: {}]   ;;  %s5849_s8 = inlined_call_operand.vmem [shape: f32[1,80], index: 8, kind: input, shape index: {}]   ;;  %s5850_s9 = inlined_call_operand.vmem [shape: f32[5,80,128], index: 9, kind: input, shape index: {}]   ;;  %s5851_s10 = inlined_call_operand.vmem [shape: f32[1,128], index: 10, kind: input, shape index: {}]   ;;  %s5852_s11 = inlined_call_operand.vmem [shape: f32[128,128], index: 11, kind: input, shape index: {}]   ;;  %s5853_s12 = inlined_call_operand.vmem [shape: f32[1,128], index: 12, kind: input, shape index: {}]   ;;  %s5854_s13 = inlined_call_operand.vmem [shape: f32[128,128], index: 13, kind: input, shape index: {}]   ;;  %s5855_s14 = inlined_call_operand.vmem [shape: f32[1,128], index: 14, kind: input, shape index: {}]   ;;  %s5856_s15 = inlined_call_operand.hbm [shape: f32[2,1,128], index: 15, kind: output, shape index: {}]  }
   0x1   :  { %5864 = sst [smem:[#allocation11_spill]] %s5856_s15 }
   0x2   :  { %20 = vsyncpa [#allocation3], 0 }
   0x3   :  { %22 = vsyncpa [#allocation3 + $0x1], 0  ;;  %s4497_s18 = smov 0   ;;  %s4499_s19 = smov 0  }
   0x4   :  { %s4501_s20 = smov 0   ;;  %s4503_s21 = smov 0  }
   0x5 LB: > { %5865 = sst [smem:[#allocation5_spill]] %s4398_s18  ;;  %s4518_s22 = sadd.s32 4294967295, %s4410_s21   ;;  %s4410_s21 = sphi %s4503_s21, %s5883_s21   ;;  %s4406_s20 = sphi %s4501_s20, %s5885_s20   ;;  %s4402_s19 = sphi %s4499_s19, %s5887_s19   ;;  %s4398_s18 = sphi %s4497_s18, %s5886_s18  }
   0x6   : > { %5866 = sst [smem:[#allocation6_spill]] %s4406_s20  ;;  %s3178_s23 = sadd.s32 4294967294, %s4410_s21  }
   0x7   : > { %5867 = sst [smem:[#allocation7_spill]] %s4410_s21  ;;  %s4522_s24 = sadd.s32 1, %s4410_s21  }
   0x8   : > { %5868 = sst [smem:[#allocation8_spill]] %s4522_s24  ;;  %s355_s25 = sadd.s32 1, %s4406_s20 }
   0x9   : > { %s352_s26 = ssub.s32 %s4410_s21, %s4522_s24  ;;  %p365_p0 = scmp.ne.s32.totalorder %s4406_s20, %s4402_s19 }
   0xa   : > { %p353_p1 = scmp.eq.s32.totalorder %s352_s26, 0  ;;  %p366_p2 = scmp.eq.s32.totalorder %s4518_s22, 1 }
   0xb   : > { %p371_p3 = scmp.ne.s32.totalorder %s4402_s19, %s4398_s18  ;;  %p372_p4 = scmp.eq.s32.totalorder %s3178_s23, 1 }
   0xc   : > { %s4533_s27 = scalar_select %p353_p1, %s4406_s20, %s355_s25  }
   0xd   : > { %p4535_p5 = por %p366_p2, %p365_p0  ;;  %p4539_p6 = por %p372_p4, %p371_p3 }
   0xe   : > { %5869 = sst [smem:[#allocation9_spill]] %s4533_s27  ;;  %p3181_p7 = scmp.ge.s32.totalorder %s4410_s21, 1 }
   0xf   : > { %s5871_s29 = scalar_select %p4539_p6, 1, 0 }
  0x10   : > { %p440_p8 = scmp.lt.s32.totalorder %s4410_s21, 3 }
  0x11   : > { %5872 = sst [smem:[#allocation10_spill]] %s5871_s29 }
  0x12   : > { %p441_p9 = pnand %p3181_p7, %p440_p8 }
  0x13   : > { %v3185_v0 = vld [vmem:[%s5842_s1 + $0x48] sm:$0xff] (!%p441_p9)  ;;  %v3187_v1 = vld [vmem:[%s5842_s1 + $0x58] sm:$0xff] (!%p441_p9)  ;;  %v3184_v2 = vld [vmem:[%s5842_s1 + $0x40] sm:$0xff] (!%p441_p9)  ;;  %vm534_vm0 = vcmask (!%p441_p9), 1045504   ;;  %p487_p10 = scmp.lt.s32.totalorder (!%p441_p9), %s4518_s22, 1  ;;  %vm4412_vm1 = vmmov (!%p441_p9), 1  }
  0x14   : > { %444 = sbr.rel (%p441_p9) target bundleno = 2274 (0x8e2), region = 80  ;;  %v3835_v3 = vpack.c.bf16 (!%p441_p9), %v3187_v1, %v3185_v0  ;;  %v3186_v4 = vld [vmem:[%s5842_s1 + $0x50] sm:$0xff] (!%p441_p9)  ;;  %v3189_v5 = vld [vmem:[%s5842_s1 + $0x68] sm:$0xff] (!%p441_p9)  ;;  %v3191_v6 = vld [vmem:[%s5842_s1 + $0x78] sm:$0x3f] (!%p441_p9)  ;;  %v4413_v12 = vmov (!%p441_p9), 0.0  }
  0x15   : > { %v3837_v7 = vpack.c.bf16 (!%p441_p9), %v3186_v4, %v3184_v2  ;;  %v3839_v8 = vpack.c.bf16 (!%p441_p9), %v3191_v6, %v3189_v5  ;;  %vm4566_vm2 = vmpackc.low (!%p441_p9), %vm534_vm0, %vm4412_vm1  ;;  %v3188_v10 = vld [vmem:[%s5842_s1 + $0x60] sm:$0xff] (!%p441_p9)  ;;  %v3190_v11 = vld [vmem:[%s5842_s1 + $0x70] sm:$0x3f] (!%p441_p9)  ;;  %605 = vmatprep.mubr.f32.mxu0 (!%p441_p9), %v4413_v12  ;;  %v4414_v16 = vmov (!%p441_p9), 0.0|0.0   ;;  %vm517_vm3 = vcmask (!%p441_p9), 1046528   ;;  %s3449_s27 = sshll.u32 (!%p441_p9), %s4518_s22, 4 }
  0x16   : > { %3836 = vmatprep.subr.bf16.mxu0 (!%p441_p9), %v3835_v3  ;;  %v497_v13 = vld [vmem:[%s5842_s1 + $0x8] sm:$0xff] (!%p441_p9)  ;;  %v499_v14 = vld [vmem:[%s5842_s1 + $0x18] sm:$0xff] (!%p441_p9)  ;;  %v3842_v15 = vpack.c.bf16 (!%p441_p9), %v3190_v11, %v3188_v10  ;;  %3865 = vmatprep.subr.bf16.mxu1 (!%p441_p9), %v4414_v16  ;;  %v496_v18 = vld [vmem:[%s5842_s1] sm:$0xff] (!%p441_p9)  ;;  %vm525_vm4 = vcmask (!%p441_p9), 244736   ;;  %vm881_vm5 = vcmask (!%p441_p9), 326656   ;;  %vm1088_vm6 = vcmask (!%p441_p9), 228352  }
  0x17   : > { %3838 = vmatpush1.bf16.msra.mxu0 (!%p441_p9), %v3837_v7  ;;  %v3845_v17 = vpack.c.bf16 (!%p441_p9), %v499_v14, %v497_v13  ;;  %v498_v19 = vld [vmem:[%s5842_s1 + $0x10] sm:$0xff] (!%p441_p9)  ;;  %v501_v20 = vld [vmem:[%s5842_s1 + $0x28] sm:$0xff] (!%p441_p9)  ;;  %v503_v21 = vld [vmem:[%s5842_s1 + $0x38] sm:$0x3f] (!%p441_p9)  ;;  %vm1095_vm7 = vcmask (!%p441_p9), 1043456   ;;  %vm1476_vm9 = vcmask (!%p441_p9), 687104  }
  0x18   : > { %3841 = vmatprep.subr.msk.bf16.mxu0 (!%p441_p9), %vm4566_vm2, %v3839_v8  ;;  %v3847_v27 = vpack.c.bf16 (!%p441_p9), %v498_v19, %v496_v18  ;;  %v3849_v30 = vpack.c.bf16 (!%p441_p9), %v503_v21, %v501_v20  ;;  %v500_v31 = vld [vmem:[%s5842_s1 + $0x20] sm:$0xff] (!%p441_p9)  ;;  %v502_v32 = vld [vmem:[%s5842_s1 + $0x30] sm:$0x3f] (!%p441_p9)  ;;  %v3205_v34 = vld [vmem:[%s5842_s1 + $0x88] sm:$0xff] (!%p441_p9)  ;;  %vm1791_vm10 = vcmask (!%p441_p9), 1044480   ;;  %vm2023_vm11 = vcmask (!%p441_p9), 261120  }
  0x19   : > { %v3207_v35 = vld [vmem:[%s5842_s1 + $0x98] sm:$0xff] (!%p441_p9)  ;;  %v860_v36 = vld [vmem:[%s5843_s2] sm:$0xff] (!%p441_p9)  ;;  %v861_v37 = vld [vmem:[%s5843_s2 + $0x8] sm:$0xff] (!%p441_p9)  ;;  %v3852_v40 = vpack.c.bf16 (!%p441_p9), %v502_v32, %v500_v31  ;;  %vm4415_vm12 = vmmov (!%p441_p9), 0   ;;  %vm2206_vm13 = vcmask (!%p441_p9), 1041408   ;;  %vm2202_vm15 = vcmask (!%p441_p9), 80896  }
  0x1a   : > { %v3866_v41 = vpack.c.bf16 (!%p441_p9), %v861_v37, %v860_v36  ;;  %v862_v42 = vld [vmem:[%s5843_s2 + $0x10] sm:$0xff] (!%p441_p9)  ;;  %v863_v43 = vld [vmem:[%s5843_s2 + $0x18] sm:$0xff] (!%p441_p9)  ;;  %v3855_v44 = vpack.c.bf16 (!%p441_p9), %v3207_v35, %v3205_v34  ;;  %v864_v46 = vld [vmem:[%s5843_s2 + $0x20] sm:$0xff] (!%p441_p9) }
  0x1b   : > { %s488_s17 = scalar_select %p487_p10, %s4518_s22, 1  ;;  %3844 = vmatpush1.bf16.msk.msra.mxu0 %vm4566_vm2, %v3842_v15  ;;  %v3869_v45 = vpack.c.bf16 %v863_v43, %v862_v42  ;;  %v865_v47 = vld [vmem:[%s5843_s2 + $0x28] sm:$0xff]  ;;  %v866_v50 = vld [vmem:[%s5843_s2 + $0x30] sm:$0xff]  ;;  %v867_v51 = vld [vmem:[%s5843_s2 + $0x38] sm:$0xff] }
  0x1c   : > { %3846 = vmatprep.subr.bf16.mxu0 %v3845_v17  ;;  %3867 = vmatpush1.bf16.msra.mxu1 %v3866_v41  ;;  %v3872_v49 = vpack.c.bf16 %v865_v47, %v864_v46  ;;  %v3204_v52 = vld [vmem:[%s5842_s1 + $0x80] sm:$0xff]  ;;  %v3206_v53 = vld [vmem:[%s5842_s1 + $0x90] sm:$0xff]  ;;  %v3209_v54 = vld [vmem:[%s5842_s1 + $0xa8] sm:$0xff]  ;;  %v3875_v56 = vpack.c.bf16 %v867_v51, %v866_v50  ;;  %s4416_s22 = smov [#allocation2]  }
  0x1d   : > { %s3452_s16 = sshll.u32 %s488_s17, 5  ;;  %3868 = vmatprep.subr.bf16.mxu1 %v4414_v16  ;;  %v3211_v55 = vld [vmem:[%s5842_s1 + $0xb8] sm:$0x3f]  ;;  %v868_v57 = vld [vmem:[%s5843_s2 + $0x40] sm:$0xff]  ;;  %v869_v58 = vld [vmem:[%s5843_s2 + $0x48] sm:$0xff]  ;;  %v3857_v59 = vpack.c.bf16 %v3206_v53, %v3204_v52  ;;  %s485_s17 = sand.u32 1, %s4402_s19  }
  0x1e   : > { %s491_s26 = scalar_lea.vmem %s5841_s0, %s3452_s16  ;;  %v3859_v60 = vpack.c.bf16 %v3211_v55, %v3209_v54  ;;  %v3208_v61 = vld [vmem:[%s5842_s1 + $0xa0] sm:$0xff]  ;;  %v3210_v62 = vld [vmem:[%s5842_s1 + $0xb0] sm:$0x3f]  ;;  %v3878_v63 = vpack.c.bf16 %v869_v58, %v868_v57  ;;  %v871_v1 = vld [vmem:[%s5843_s2 + $0x58] sm:$0xff]  ;;  %s486_s24 = scalar_lea.vmem [#allocation2], %s485_s17 }
  0x1f   : > { %v4602_v22 = vld [vmem:[%s491_s26] sm:$0xff]  ;;  %v4604_v23 = vld [vmem:[%s491_s26 + $0x8] sm:$0xff]  ;;  %v4606_v24 = vld [vmem:[%s491_s26 + $0x10] sm:$0xff]  ;;  %v3862_v2 = vpack.c.bf16 %v3210_v62, %v3208_v61  ;;  %s3123_s29 = sshll.u32 %s486_s24, 4  ;;  %s3111_s15 = scalar_lea.sflag [#allocation3], %s485_s17  ;;  %s5801_s29 = int_to_ptr.vmem [resolvable:$true] %s3123_s29 }
  0x20   : > { %v518_v25 = vrot.slane %v4602_v22, 1  ;;  %v519_v26 = vrot.slane %v4604_v23, 1  ;;  %v521_v28 = vrot.slane %v4606_v24, 1  ;;  %v4613_v29 = vld [vmem:[%s491_s26 + $0x18] sm:$0x3f]  ;;  %3870 = vmatpush1.bf16.msra.mxu1 %v3869_v45  ;;  %v870_v0 = vld [vmem:[%s5843_s2 + $0x50] sm:$0xff]  ;;  %vm4853_vm8 = vmpackc.low %vm1095_vm7, %vm4412_vm1 }
  0x21   : > { %v523_v39 = vrot.slane %v4613_v29, 1  ;;  %3871 = vmatprep.subr.bf16.mxu1 %v4414_v16  ;;  %v3881_v3 = vpack.c.bf16 %v871_v1, %v870_v0  ;;  %v872_v4 = vld [vmem:[%s5843_s2 + $0x60] sm:$0xff]  ;;  %v873_v5 = vld [vmem:[%s5843_s2 + $0x68] sm:$0xff]  ;;  %v874_v7 = vld [vmem:[%s5843_s2 + $0x70] sm:$0xff]  ;;  %v742_v9 = vrot.slane %v4602_v22, 2  ;;  %v743_v10 = vrot.slane %v4604_v23, 2 }
  0x22   : > { %v520_v33 = vsel %vm517_vm3, %v518_v25, %v519_v26  ;;  %v522_v38 = vsel %vm517_vm3, %v519_v26, %v521_v28  ;;  %v3884_v6 = vpack.c.bf16 %v873_v5, %v872_v4  ;;  %v875_v8 = vld [vmem:[%s5843_s2 + $0x78] sm:$0xff]  ;;  %v3222_v11 = vld [vmem:[%s5843_s2 + $0xa8] sm:$0xff]  ;;  %v3223_v13 = vld [vmem:[%s5843_s2 + $0xb0] sm:$0xff]  ;;  %v745_v19 = vrot.slane %v4606_v24, 2  ;;  %s5879_s26 = sld [smem:[#allocation11_spill]]  ;;  %s4348_s18 = scalar_lea.vmem %s5801_s29, 16 }
  0x23   : > { %3194 = vmatmul.mubr.msk.f32.vlgmr.msra.gmra.mrb[0].mxu0 %vm525_vm4, %v520_v33  ;;  %v524_v48 = vsel %vm517_vm3, %v521_v28, %v523_v39  ;;  %v3887_v14 = vpack.c.bf16 %v875_v8, %v874_v7  ;;  %v876_v15 = vld [vmem:[%s5843_s2 + $0x80] sm:$0xff]  ;;  %v877_v17 = vld [vmem:[%s5843_s2 + $0x88] sm:$0xff]  ;;  %v744_v18 = vsel %vm534_vm0, %v742_v9, %v743_v10  ;;  %v3896_v20 = vpack.c.bf16 %v3223_v13, %v3222_v11  ;;  %v3224_v21 = vld [vmem:[%s5843_s2 + $0xb8] sm:$0xff]  ;;  %p4349_p11 = scmp.ne.s32.totalorder %s5801_s29, %s4348_s18  ;;  %s4352_s21 = sshll.u32 %s4416_s22, 4  ;;  %s4353_s21 = int_to_ptr.vmem [resolvable:$false] %s4352_s21 }
  0x24   : > { %611 = vmatprep.mubr.f32.mxu0 %v4413_v12  ;;  %3848 = vmatpush1.bf16.msra.mxu0 %v3847_v27  ;;  %v878_v25 = vld [vmem:[%s5843_s2 + $0x90] sm:$0xff]  ;;  %v746_v26 = vsel %vm534_vm0, %v743_v10, %v745_v19  ;;  %v747_v27 = vrot.slane %v4613_v29, 2  ;;  %v3228_v34 = vld [vmem:[%s5843_s2 + $0xd8] sm:$0xff]  ;;  %v3229_v35 = vld [vmem:[%s5843_s2 + $0xe0] sm:$0xff]  ;;  %s4354_s16 = scalar_lea.vmem %s4353_s21, 32  ;;  %p4355_p0 = scmp.lt.s32.totalorder %s5801_s29, %s4353_s21 }
  0x25   : > { %3851 = vmatprep.subr.msk.bf16.mxu0 %vm4566_vm2, %v3849_v30  ;;  %3873 = vmatpush1.bf16.msra.mxu1 %v3872_v49  ;;  %v3226_v30 = vld [vmem:[%s5843_s2 + $0xc8] sm:$0xff]  ;;  %v3227_v31 = vld [vmem:[%s5843_s2 + $0xd0] sm:$0xff]  ;;  %v3905_v36 = vpack.c.bf16 %v3229_v35, %v3228_v34  ;;  %v3233_v41 = vld [vmem:[%s5843_s2 + $0x100] sm:$0xff]  ;;  %p4350_p12 = pnand %p4349_p11, %p4535_p5  ;;  %p4356_p1 = scmp.lt.s32.totalorder %s4354_s16, %s4348_s18 }
  0x26   : > { %3874 = vmatprep.subr.bf16.mxu1 %v4414_v16  ;;  %v3902_v33 = vpack.c.bf16 %v3227_v31, %v3226_v30  ;;  %v3230_v37 = vld [vmem:[%s5843_s2 + $0xe8] sm:$0xff]  ;;  %v3236_v46 = vld [vmem:[%s5843_s2 + $0x118] sm:$0xff]  ;;  %v3237_v47 = vld [vmem:[%s5843_s2 + $0x120] sm:$0xff] }
  0x27   : > { %3195 = vmatmul.mubr.msk.f32.gmra.mrb[2].mxu0 %vm525_vm4, %v522_v38  ;;  %v3231_v38 = vld [vmem:[%s5843_s2 + $0xf0] sm:$0xff]  ;;  %v3234_v43 = vld [vmem:[%s5843_s2 + $0x108] sm:$0xff]  ;;  %v3240_v52 = vld [vmem:[%s5843_s2 + $0x138] sm:$0xff]  ;;  %p4351_p13 = pneg %p4350_p12  ;;  %p4357_p2 = por %p4356_p1, %p4355_p0 }
  0x28   : > { %617 = vmatprep.mubr.f32.mxu0 %v4413_v12  ;;  %3854 = vmatpush1.bf16.msk.msra.mxu0 %vm4566_vm2, %v3852_v40  ;;  %v3232_v40 = vld [vmem:[%s5843_s2 + $0xf8] sm:$0xff]  ;;  %v3238_v49 = vld [vmem:[%s5843_s2 + $0x128] sm:$0xff]  ;;  %v3239_v50 = vld [vmem:[%s5843_s2 + $0x130] sm:$0xff]  ;;  %s5799_s30 = scalar_lea.hbm %s5879_s26, %s3449_s27 }
  0x29   : > { %3856 = vmatprep.subr.bf16.mxu0 %v3855_v44  ;;  %3876 = vmatpush1.bf16.msra.mxu1 %v3875_v56  ;;  %v3911_v42 = vpack.c.bf16 %v3233_v41, %v3232_v40  ;;  %v3235_v44 = vld [vmem:[%s5843_s2 + $0x110] sm:$0xff]  ;;  %v3920_v51 = vpack.c.bf16 %v3239_v50, %v3238_v49  ;;  %v3241_v53 = vld [vmem:[%s5843_s2 + $0x140] sm:$0xff]  ;;  %v3242_v56 = vld [vmem:[%s5843_s2 + $0x148] sm:$0xff]  ;;  %p4358_p3 = pnand %p4357_p2, %p4351_p13 }
  0x2a   : > { %3877 = vmatprep.subr.bf16.mxu1 %v4414_v16  ;;  %v3914_v45 = vpack.c.bf16 %v3235_v44, %v3234_v43  ;;  %v3923_v54 = vpack.c.bf16 %v3241_v53, %v3240_v52  ;;  %v880_v55 = vld [vmem:[%s5843_s2 + $0xa0] sm:$0xff]  ;;  %v3265_v30 = vld [vmem:[%s5846_s5 + $0xc8] sm:$0xff]  ;;  %v3271_v40 = vld [vmem:[%s5846_s5 + $0xf8] sm:$0xff] }
  0x2b   : > { %3196 = vmatmul.mubr.msk.f32.gmra.mrb[4].mxu0 %vm525_vm4, %v524_v48  ;;  %v3917_v48 = vpack.c.bf16 %v3237_v47, %v3236_v46  ;;  %v1086_v1 = vld [vmem:[%s5844_s3] sm:$0xff]  ;;  %v3269_v35 = vld [vmem:[%s5846_s5 + $0xe8] sm:$0xff]  ;;  %v3275_v46 = vld [vmem:[%s5846_s5 + $0x118] sm:$0xff] }
  0x2c   : > { %623 = vmatprep.mubr.f32.mxu0 %v4413_v12  ;;  %v3273_v41 = vld [vmem:[%s5846_s5 + $0x108] sm:$0xff]  ;;  %v3272_v44 = vld [vmem:[%s5846_s5 + $0x100] sm:$0xff]  ;;  %v3274_v49 = vld [vmem:[%s5846_s5 + $0x110] sm:$0xff] }
  0x2d   : > { %3879 = vmatpush1.bf16.msra.mxu1 %v3878_v63  ;;  %v3973_v43 = vpack.c.bf16 %v3273_v41, %v3271_v40  ;;  %v3277_v47 = vld [vmem:[%s5846_s5 + $0x128] sm:$0xff]  ;;  %v3276_v50 = vld [vmem:[%s5846_s5 + $0x120] sm:$0xff]  ;;  %v3279_v52 = vld [vmem:[%s5846_s5 + $0x138] sm:$0xff] }
  0x2e   : > { %3880 = vmatprep.subr.bf16.mxu1 %v4414_v16  ;;  %v3281_v53 = vld [vmem:[%s5846_s5 + $0x148] sm:$0xff]  ;;  %v2019_v41 = vld [vmem:[%s5847_s6 + $0x80] sm:$0xff]  ;;  %vm5441_vm14 = vmpackc.low %vm2206_vm13, %vm4412_vm1 }
  0x2f   : > { %3197 = vmatmul.mubr.msk.f32.gmra.mrb[6].mxu0 %vm525_vm4, %v523_v39  ;;  %v3908_v39 = vpack.c.bf16 %v3231_v38, %v3230_v37  ;;  %v3268_v37 = vld [vmem:[%s5846_s5 + $0xe0] sm:$0xff] }
  0x30   : > { %708 = vmatprep.mubr.f32.mxu0 %v4413_v12 }
  0x31   : > { %3882 = vmatpush1.bf16.msra.mxu1 %v3881_v3 }
  0x32   : > { %3883 = vmatprep.subr.bf16.mxu1 %v4414_v16 }
  0x33   : > { %3200 = vmatmul.mubr.msk.f32.vlgmr.msra.gmra.mrb[0].mxu0 %vm525_vm4, %v4602_v22  ;;  %v3225_v22 = vld [vmem:[%s5843_s2 + $0xc0] sm:$0xff] }
  0x34   : > { %714 = vmatprep.mubr.f32.mxu0 %v4413_v12  ;;  %3858 = vmatpush1.bf16.msra.mxu0 %v3857_v59  ;;  %v3899_v28 = vpack.c.bf16 %v3225_v22, %v3224_v21 }
  0x35   : > { %3861 = vmatprep.subr.msk.bf16.mxu0 %vm4566_vm2, %v3859_v60  ;;  %3885 = vmatpush1.bf16.msra.mxu1 %v3884_v6 }
  0x36   : > { %3886 = vmatprep.subr.bf16.mxu1 %v4414_v16 }
  0x37   : > { %3201 = vmatmul.mubr.msk.f32.gmra.mrb[2].mxu0 %vm525_vm4, %v4604_v23  ;;  %v3890_v23 = vpack.c.bf16 %v877_v17, %v876_v15 }
  0x38   : > { %720 = vmatprep.mubr.f32.mxu0 %v4413_v12  ;;  %3864 = vmatpush1.bf16.msk.msra.mxu0 %vm4566_vm2, %v3862_v2 }
  0x39   : > { %3895 = vmatprep.subr.bf16.mxu0 %v4414_v16  ;;  %3888 = vmatpush1.bf16.msra.mxu1 %v3887_v14 }
  0x3a   : > { %3889 = vmatprep.subr.bf16.mxu1 %v4414_v16 }
  0x3b   : > { %3202 = vmatmul.mubr.msk.f32.gmra.mrb[4].mxu0 %vm525_vm4, %v4606_v24  ;;  %v879_v24 = vld [vmem:[%s5843_s2 + $0x98] sm:$0xff] }
  0x3c   : > { %726 = vmatprep.mubr.f32.mxu0 %v4413_v12  ;;  %v3893_v32 = vpack.c.bf16 %v879_v24, %v878_v25  ;;  %v1087_v24 = vld [vmem:[%s5844_s3 + $0x8] sm:$0x3f] }
  0x3d   : > { %3891 = vmatpush1.bf16.msra.mxu1 %v3890_v23 }
  0x3e   : > { %3892 = vmatprep.subr.bf16.mxu1 %v4414_v16 }
  0x3f   : > { %3203 = vmatmul.mubr.msk.f32.gmra.mrb[6].mxu0 %vm525_vm4, %v4613_v29  ;;  %v748_v29 = vsel %vm534_vm0, %v745_v19, %v747_v27 }
  0x40   : > { %827 = vmatprep.mubr.f32.mxu0 %v4413_v12 }
  0x41   : > { %3894 = vmatpush1.bf16.msra.mxu1 %v3893_v32  ;;  %v3262_v32 = vld [vmem:[%s5846_s5 + $0xb0] sm:$0xff] }
  0x42   : > { %934 = vmatprep.subr.mxu1 %v4413_v12 }
  0x43   : > { %3214 = vmatmul.mubr.msk.f32.vlgmr.msra.gmra.mrb[0].mxu0 %vm525_vm4, %v744_v18 }
  0x44   : > { %833 = vmatprep.mubr.f32.mxu0 %v4413_v12  ;;  %3897 = vmatpush1.bf16.msra.mxu0 %v3896_v20 }
  0x45   : > { %3898 = vmatprep.subr.bf16.mxu0 %v4414_v16  ;;  %935 = vmatpush1.msra.mxu1 %v880_v55  ;;  %v3278_v55 = vld [vmem:[%s5846_s5 + $0x130] sm:$0xff] }
  0x47   : > { %3215 = vmatmul.mubr.msk.f32.gmra.mrb[2].mxu0 %vm525_vm4, %v746_v26  ;;  %v3253_v26 = vld [vmem:[%s5844_s3 + $0x10] sm:$0xff] }
  0x48   : > { %839 = vmatprep.mubr.f32.mxu0 %v4413_v12  ;;  %3900 = vmatpush1.bf16.msra.mxu0 %v3899_v28  ;;  %v3263_v28 = vld [vmem:[%s5846_s5 + $0xb8] sm:$0xff] }
  0x49   : > { %3901 = vmatprep.subr.bf16.mxu0 %v4414_v16  ;;  %v3965_v31 = vpack.c.bf16 %v3265_v30, %v3263_v28  ;;  %v2016_v28 = vld [vmem:[%s5847_s6 + $0x68] sm:$0xff] }
  0x4b   : > { %3216 = vmatmul.mubr.msk.f32.gmra.mrb[4].mxu0 %vm525_vm4, %v748_v29  ;;  %v3264_v29 = vld [vmem:[%s5846_s5 + $0xc0] sm:$0xff] }
  0x4c   : > { %845 = vmatprep.mubr.f32.mxu0 %v4413_v12  ;;  %3903 = vmatpush1.bf16.msra.mxu0 %v3902_v33  ;;  %v3267_v33 = vld [vmem:[%s5846_s5 + $0xd8] sm:$0xff]  ;;  %v3967_v34 = vpack.c.bf16 %v3264_v29, %v3262_v32 }
  0x4d   : > { %3904 = vmatprep.subr.bf16.mxu0 %v4414_v16  ;;  %v3969_v38 = vpack.c.bf16 %v3269_v35, %v3267_v33  ;;  %v2018_v32 = vld [vmem:[%s5847_s6 + $0x78] sm:$0xff]  ;;  %v3261_v35 = vld [vmem:[%s5845_s4] ss:$0 sm:$0xff] }
  0x4f   : > { %3217 = vmatmul.mubr.msk.f32.gmra.mrb[6].mxu0 %vm525_vm4, %v747_v27  ;;  %v3254_v27 = vld [vmem:[%s5844_s3 + $0x18] sm:$0x3f] }
  0x50   : > { %3906 = vmatpush1.bf16.msra.mxu0 %v3905_v36  ;;  %v3266_v36 = vld [vmem:[%s5846_s5 + $0xd0] sm:$0xff] }
  0x51   : > { %3907 = vmatprep.subr.bf16.mxu0 %v4414_v16 }
  0x54   : > { %3909 = vmatpush1.bf16.msra.mxu0 %v3908_v39  ;;  %v3971_v39 = vpack.c.bf16 %v3268_v37, %v3266_v36  ;;  %v1426_v37 = vld [vmem:[%s5846_s5] sm:$0xff] }
  0x55   : > { %3910 = vmatprep.subr.bf16.mxu0 %v4414_v16 }
  0x58   : > { %3912 = vmatpush1.bf16.msra.mxu0 %v3911_v42  ;;  %v3270_v42 = vld [vmem:[%s5846_s5 + $0xf0] sm:$0xff] }
  0x59   : > { %3913 = vmatprep.subr.bf16.mxu0 %v4414_v16 }
  0x5c   : > { %3915 = vmatpush1.bf16.msra.mxu0 %v3914_v45  ;;  %v3975_v45 = vpack.c.bf16 %v3272_v44, %v3270_v42  ;;  %v2020_v42 = vld [vmem:[%s5847_s6 + $0x88] sm:$0xff] }
  0x5d   : > { %3916 = vmatprep.subr.bf16.mxu0 %v4414_v16 }
  0x60   : > { %3918 = vmatpush1.bf16.msra.mxu0 %v3917_v48  ;;  %v3977_v48 = vpack.c.bf16 %v3277_v47, %v3275_v46  ;;  %v1431_v46 = vld [vmem:[%s5846_s5 + $0x28] sm:$0xff] }
  0x61   : > { %3919 = vmatprep.subr.bf16.mxu0 %v4414_v16 }
  0x64   : > { %3921 = vmatpush1.bf16.msra.mxu0 %v3920_v51  ;;  %v3979_v51 = vpack.c.bf16 %v3276_v50, %v3274_v49  ;;  %v4090_v49 = vpack.c.bf16 %v2020_v42, %v2019_v41  ;;  %v2021_v50 = vld [vmem:[%s5847_s6 + $0x90] sm:$0xff]  ;;  %v3300_v42 = vld [vmem:[%s5846_s5 + $0x1a0] sm:$0xff] }
  0x65   : > { %3922 = vmatprep.subr.bf16.mxu0 %v4414_v16 }
  0x68   : > { %3924 = vmatpush1.bf16.msra.mxu0 %v3923_v54  ;;  %v3981_v54 = vpack.c.bf16 %v3281_v53, %v3279_v52 }
  0x69   : > { %1041 = vmatprep.subr.mxu0 %v4413_v12 }
  0x6c   : > { %1042 = vmatpush1.msra.mxu0 %v3242_v56  ;;  %v3280_v56 = vld [vmem:[%s5846_s5 + $0x140] sm:$0xff] }
 0x116   : > { %v829_v57 = vpop.f32.mrb[0].mxu0 }
 0x117   : > { %v831_v58 = vpop.f32.mrb[1].mxu0 }
 0x118   : > { %3218 = vmatprep.mubr.msk.f32.mxu1 %vm881_vm5, %v831_v58  ;;  %3243 = vmatprep.mubr.msk.f32.mxu0 %vm881_vm5, %v831_v58  ;;  %v3283_v58 = vld [vmem:[%s5846_s5 + $0x158] sm:$0xf] }
 0x119   : > { %959 = vmatmul.mubr.f32.vlgmr.msra.gmra.mrb[0].mxu1 %v829_v57  ;;  %1066 = vmatmul.mubr.f32.vlgmr.msra.gmra.mrb[8].mxu0 %v829_v57  ;;  %v3983_v57 = vpack.c.bf16 %v3280_v56, %v3278_v55 }
 0x11a   : > { %v835_v59 = vpop.f32.mrb[2].mxu0 }
 0x11b   : > { %v837_v60 = vpop.f32.mrb[3].mxu0 }
 0x11c   : > { %3219 = vmatprep.mubr.msk.f32.mxu1 %vm881_vm5, %v837_v60  ;;  %3244 = vmatprep.mubr.msk.f32.mxu0 %vm881_vm5, %v837_v60  ;;  %v1427_v60 = vld [vmem:[%s5846_s5 + $0x8] sm:$0xff] }
 0x11d   : > { %964 = vmatmul.mubr.f32.gmra.mrb[2].mxu1 %v835_v59  ;;  %1071 = vmatmul.mubr.f32.gmra.mrb[10].mxu0 %v835_v59  ;;  %v3282_v59 = vld [vmem:[%s5846_s5 + $0x150] sm:$0xf] }
 0x11e   : > { %v841_v61 = vpop.f32.mrb[4].mxu0 }
 0x11f   : > { %v843_v62 = vpop.f32.mrb[5].mxu0 }
 0x120   : > { %3220 = vmatprep.mubr.msk.f32.mxu1 %vm881_vm5, %v843_v62  ;;  %3245 = vmatprep.mubr.msk.f32.mxu0 %vm881_vm5, %v843_v62 }
 0x121   : > { %969 = vmatmul.mubr.f32.gmra.mrb[4].mxu1 %v841_v61  ;;  %1076 = vmatmul.mubr.f32.gmra.mrb[12].mxu0 %v841_v61  ;;  %v1429_v61 = vld [vmem:[%s5846_s5 + $0x18] sm:$0xff] }
 0x122   : > { %v847_v63 = vpop.f32.mrb[6].mxu0  ;;  %v3985_v62 = vpack.c.bf16 %v1429_v61, %v1427_v60  ;;  %v1430_v61 = vld [vmem:[%s5846_s5 + $0x20] sm:$0xff] }
 0x123   : > { %v849_v0 = vpop.f32.mrb[7].mxu0 }
 0x124   : > { %3221 = vmatprep.mubr.msk.f32.mxu1 %vm881_vm5, %v849_v0  ;;  %3246 = vmatprep.mubr.msk.f32.mxu0 %vm881_vm5, %v849_v0  ;;  %v2004_v0 = vld [vmem:[%s5847_s6 + $0x8] sm:$0xff] }
 0x125   : > { %974 = vmatmul.mubr.f32.gmra.mrb[6].mxu1 %v847_v63  ;;  %1081 = vmatmul.mubr.f32.gmra.mrb[14].mxu0 %v847_v63  ;;  %v2003_v63 = vld [vmem:[%s5847_s6] sm:$0xff] }
 0x126   : > { %3597 = vmatprep.mubr.msk.f32.mxu1 %vm1088_vm6, %v1086_v1  ;;  %3586 = vmatprep.mubr.msk.f32.mxu0 %vm1088_vm6, %v1086_v1  ;;  %v2005_v1 = vld [vmem:[%s5847_s6 + $0x10] sm:$0xff] }
 0x1ec   : > { %v960_v2 = vpop.f32.mrb[0].mxu1  ;;  %v1067_v3 = vpop.f32.mrb[8].mxu0 }
 0x1ed   : > { %v962_v4 = vpop.f32.mrb[1].mxu1  ;;  %v1069_v5 = vpop.f32.mrb[9].mxu0 }
 0x1ee   : > { %v2007_v5 = vld [vmem:[%s5847_s6 + $0x20] sm:$0xff] }
 0x1f0   : > { %v965_v6 = vpop.f32.mrb[2].mxu1  ;;  %v1072_v7 = vpop.f32.mrb[10].mxu0 }
 0x1f1   : > { %v3925_v8 = vpack.c.bf16 %v965_v6, %v960_v2  ;;  %v3935_v9 = vpack.c.bf16 %v1072_v7, %v1067_v3  ;;  %v967_v10 = vpop.f32.mrb[3].mxu1  ;;  %v1074_v11 = vpop.f32.mrb[11].mxu0  ;;  %v4066_v2 = vpack.c.bf16 %v2004_v0, %v2003_v63  ;;  %v2006_v3 = vld [vmem:[%s5847_s6 + $0x18] sm:$0xff]  ;;  %v2008_v6 = vld [vmem:[%s5847_s6 + $0x28] sm:$0xff] }
 0x1f2   : > { %v4069_v4 = vpack.c.bf16 %v2006_v3, %v2005_v1  ;;  %v4072_v7 = vpack.c.bf16 %v2008_v6, %v2007_v5  ;;  %v1435_v1 = vld [vmem:[%s5846_s5 + $0x48] sm:$0xff] }
 0x1f3   : > { %3926 = vmatprep.subr.bf16.mxu0 %v3925_v8  ;;  %3936 = vmatprep.subr.bf16.mxu1 %v3935_v9 }
 0x1f4   : > { %v970_v13 = vpop.f32.mrb[4].mxu1  ;;  %v1077_v14 = vpop.f32.mrb[12].mxu0  ;;  %3928 = vmatpush3.bf16.msra.mxu0 %v3925_v8  ;;  %3938 = vmatpush3.bf16.msra.mxu1 %v3935_v9 }
 0x1f5   : > { %v972_v15 = vpop.f32.mrb[5].mxu1  ;;  %v1079_v17 = vpop.f32.mrb[13].mxu0 }
 0x1f8   : > { %v975_v19 = vpop.f32.mrb[6].mxu1  ;;  %v1082_v20 = vpop.f32.mrb[14].mxu0 }
 0x1f9   : > { %v3929_v21 = vpack.c.bf16 %v975_v19, %v970_v13  ;;  %v3939_v22 = vpack.c.bf16 %v1082_v20, %v1077_v14  ;;  %v977_v23 = vpop.f32.mrb[7].mxu1  ;;  %v1084_v25 = vpop.f32.mrb[15].mxu0  ;;  %v2011_v19 = vld [vmem:[%s5847_s6 + $0x40] sm:$0xff]  ;;  %v2012_v20 = vld [vmem:[%s5847_s6 + $0x48] sm:$0xff] }
 0x1fa   : > { %v2014_v23 = vld [vmem:[%s5847_s6 + $0x58] sm:$0xff] }
 0x1fb   : > { %3931 = vmatprep.subr.msk.bf16.mxu0 %vm4853_vm8, %v3929_v21  ;;  %3941 = vmatprep.subr.msk.bf16.mxu1 %vm4853_vm8, %v3939_v22 }
 0x1fc   : > { %3934 = vmatpush3.bf16.msk.msra.mxu0 %vm4853_vm8, %v3929_v21  ;;  %3944 = vmatpush3.bf16.msk.msra.mxu1 %vm4853_vm8, %v3939_v22 }
 0x1fd   : > { %3946 = vmatprep.subr.bf16.mxu1 %v3925_v8  ;;  %3966 = vmatprep.subr.bf16.mxu0 %v3965_v31  ;;  %v2017_v31 = vld [vmem:[%s5847_s6 + $0x70] sm:$0xff] }
 0x1ff   : > { %3598 = vmatmul.mubr.msk.f32.vlgmr.msra.gmra.mrb[8].mxu1 %vm1088_vm6, %v1087_v24  ;;  %3587 = vmatmul.mubr.msk.f32.vlgmr.msra.gmra.mrb[16].mxu0 %vm1088_vm6, %v1087_v24 }
 0x200   : > { %3948 = vmatpush3.bf16.msra.mxu1 %v3925_v8  ;;  %3608 = vmatprep.mubr.msk.f32.mxu1 %vm1088_vm6, %v3253_v26  ;;  %v2009_v8 = vld [vmem:[%s5847_s6 + $0x30] sm:$0xff] }
 0x201   : > { %3951 = vmatprep.subr.msk.bf16.mxu1 %vm4853_vm8, %v3929_v21  ;;  %1551 = vmatprep.mubr.f32.mxu0 %v4413_v12 }
 0x202   : > { %3968 = vmatpush1.bf16.msra.mxu0 %v3967_v34 }
 0x203   : > { %3970 = vmatprep.subr.bf16.mxu0 %v3969_v38  ;;  %v1428_v38 = vld [vmem:[%s5846_s5 + $0x10] sm:$0xff] }
 0x204   : > { %3954 = vmatpush3.bf16.msk.msra.mxu1 %vm4853_vm8, %v3929_v21  ;;  %v4078_v21 = vpack.c.bf16 %v2012_v20, %v2011_v19  ;;  %v1445_v19 = vld [vmem:[%s5846_s5 + $0x98] sm:$0xff] }
 0x205   : > { %3956 = vmatprep.subr.bf16.mxu1 %v3935_v9 }
 0x206   : > { %3972 = vmatpush1.bf16.msra.mxu0 %v3971_v39  ;;  %v4087_v39 = vpack.c.bf16 %v2018_v32, %v2017_v31  ;;  %v3297_v31 = vld [vmem:[%s5846_s5 + $0x188] sm:$0xff]  ;;  %v3299_v32 = vld [vmem:[%s5846_s5 + $0x198] sm:$0xff] }
 0x207   : > { %3609 = vmatmul.mubr.msk.f32.vlgmr.msra.gmra.mrb[10].mxu1 %vm1088_vm6, %v3254_v27  ;;  %3974 = vmatprep.subr.bf16.mxu0 %v3973_v43 }
 0x208   : > { %3958 = vmatpush3.bf16.msra.mxu1 %v3935_v9  ;;  %3619 = vmatprep.mubr.msk.f32.mxu1 %vm1088_vm6, %v3253_v26  ;;  %v2010_v9 = vld [vmem:[%s5847_s6 + $0x38] sm:$0xff] }
 0x209   : > { %3961 = vmatprep.subr.msk.bf16.mxu1 %vm4853_vm8, %v3939_v22  ;;  %v4075_v18 = vpack.c.bf16 %v2010_v9, %v2009_v8  ;;  %v1434_v8 = vld [vmem:[%s5846_s5 + $0x40] sm:$0xff]  ;;  %v1436_v9 = vld [vmem:[%s5846_s5 + $0x50] sm:$0xff] }
 0x20a   : > { %3976 = vmatpush1.bf16.msra.mxu0 %v3975_v45  ;;  %v3987_v45 = vpack.c.bf16 %v1428_v38, %v1426_v37  ;;  %v3298_v37 = vld [vmem:[%s5846_s5 + $0x190] sm:$0xff]  ;;  %v3301_v38 = vld [vmem:[%s5846_s5 + $0x1a8] sm:$0xff] }
 0x20b   : > { %3978 = vmatprep.subr.bf16.mxu0 %v3977_v48  ;;  %v1433_v48 = vld [vmem:[%s5846_s5 + $0x38] sm:$0xff] }
 0x20c   : > { %3964 = vmatpush3.bf16.msk.msra.mxu1 %vm4853_vm8, %v3939_v22  ;;  %v2013_v22 = vld [vmem:[%s5847_s6 + $0x50] sm:$0xff]  ;;  %v3989_v60 = vpack.c.bf16 %v1433_v48, %v1431_v46  ;;  %v3307_v46 = vld [vmem:[%s5846_s5 + $0x1d8] sm:$0xff] }
 0x20d   : > { %4065 = vmatprep.subr.bf16.mxu1 %v4414_v16  ;;  %v4081_v26 = vpack.c.bf16 %v2014_v23, %v2013_v22  ;;  %v1442_v22 = vld [vmem:[%s5846_s5 + $0x80] sm:$0xff]  ;;  %v1444_v23 = vld [vmem:[%s5846_s5 + $0x90] sm:$0xff] }
 0x20e   : > { %3980 = vmatpush1.bf16.msra.mxu0 %v3979_v51  ;;  %v2022_v51 = vld [vmem:[%s5847_s6 + $0x98] sm:$0xff] }
 0x20f   : > { %3620 = vmatmul.mubr.msk.f32.vlgmr.msra.gmra.mrb[12].mxu1 %vm1088_vm6, %v3254_v27  ;;  %3982 = vmatprep.subr.bf16.mxu0 %v3981_v54  ;;  %v2015_v27 = vld [vmem:[%s5847_s6 + $0x60] sm:$0xff]  ;;  %v4093_v63 = vpack.c.bf16 %v2022_v51, %v2021_v50  ;;  %v3306_v50 = vld [vmem:[%s5846_s5 + $0x1d0] sm:$0xff]  ;;  %v3309_v51 = vld [vmem:[%s5846_s5 + $0x1e8] sm:$0xff] }
 0x210   : > { %4067 = vmatpush1.bf16.msra.mxu1 %v4066_v2  ;;  %v4084_v30 = vpack.c.bf16 %v2016_v28, %v2015_v27  ;;  %v1437_v2 = vld [vmem:[%s5846_s5 + $0x58] sm:$0xff]  ;;  %v3292_v28 = vld [vmem:[%s5846_s5 + $0x160] sm:$0xff] }
 0x211   : > { %4068 = vmatprep.subr.bf16.mxu1 %v4414_v16  ;;  %v3295_v27 = vld [vmem:[%s5846_s5 + $0x178] sm:$0xff] }
 0x212   : > { %3984 = vmatpush1.bf16.msra.mxu0 %v3983_v57 }
 0x213   : > { %3284 = vmatprep.subr.msk.mxu0 %vm1095_vm7, %v3283_v58 }
 0x214   : > { %4070 = vmatpush1.bf16.msra.mxu1 %v4069_v4 }
 0x215   : > { %4071 = vmatprep.subr.bf16.mxu1 %v4414_v16 }
 0x216   : > { %3285 = vmatpush1.msk.msra.mxu0 %vm1095_vm7, %v3282_v59 }
 0x217   : > { %3986 = vmatprep.subr.bf16.mxu0 %v3985_v62  ;;  %v1432_v62 = vld [vmem:[%s5846_s5 + $0x30] sm:$0xff] }
 0x218   : > { %4073 = vmatpush1.bf16.msra.mxu1 %v4072_v7  ;;  %v3991_v6 = vpack.c.bf16 %v1432_v62, %v1430_v61  ;;  %v3993_v7 = vpack.c.bf16 %v1437_v2, %v1435_v1  ;;  %v3313_v61 = vld [vmem:[%s5846_s5 + $0x208] sm:$0xf]  ;;  %v3319_v62 = vld [vmem:[%s5846_s5 + $0x218] sm:$0xff]  ;;  %v3320_v1 = vld [vmem:[%s5846_s5 + $0x220] sm:$0xff] }
 0x219   : > { %4074 = vmatprep.subr.bf16.mxu1 %v4414_v16  ;;  %v3323_v2 = vld [vmem:[%s5846_s5 + $0x238] sm:$0xff] }
 0x21c   : > { %4076 = vmatpush1.bf16.msra.mxu1 %v4075_v18  ;;  %v1443_v18 = vld [vmem:[%s5846_s5 + $0x88] sm:$0xff] }
 0x21d   : > { %4077 = vmatprep.subr.bf16.mxu1 %v4414_v16 }
 0x220   : > { %4079 = vmatpush1.bf16.msra.mxu1 %v4078_v21  ;;  %v4001_v21 = vpack.c.bf16 %v1445_v19, %v1443_v18  ;;  %v3326_v19 = vld [vmem:[%s5846_s5 + $0x250] sm:$0xff] }
 0x221   : > { %4080 = vmatprep.subr.bf16.mxu1 %v4414_v16 }
 0x224   : > { %4082 = vmatpush1.bf16.msra.mxu1 %v4081_v26  ;;  %v3293_v26 = vld [vmem:[%s5846_s5 + $0x168] sm:$0xff] }
 0x225   : > { %4083 = vmatprep.subr.bf16.mxu1 %v4414_v16 }
 0x228   : > { %4085 = vmatpush1.bf16.msra.mxu1 %v4084_v30  ;;  %v3294_v30 = vld [vmem:[%s5846_s5 + $0x170] sm:$0xff] }
 0x229   : > { %4086 = vmatprep.subr.bf16.mxu1 %v4414_v16 }
 0x22c   : > { %4088 = vmatpush1.bf16.msra.mxu1 %v4087_v39  ;;  %v3303_v39 = vld [vmem:[%s5846_s5 + $0x1b8] sm:$0xff] }
 0x22d   : > { %4089 = vmatprep.subr.bf16.mxu1 %v4414_v16  ;;  %v4013_v41 = vpack.c.bf16 %v3303_v39, %v3301_v38  ;;  %v3351_v38 = vld [vmem:[%s5846_s5 + $0x2f8] sm:$0xff]  ;;  %v3338_v39 = vld [vmem:[%s5846_s5 + $0x2b0] sm:$0xf] }
 0x230   : > { %4091 = vmatpush1.bf16.msra.mxu1 %v4090_v49  ;;  %v3304_v49 = vld [vmem:[%s5846_s5 + $0x1c0] sm:$0xff] }
 0x231   : > { %4092 = vmatprep.subr.bf16.mxu1 %v4414_v16 }
 0x234   : > { %4094 = vmatpush1.bf16.msra.mxu1 %v4093_v63  ;;  %v3321_v63 = vld [vmem:[%s5846_s5 + $0x228] sm:$0xff] }
 0x235   : > { %4095 = vmatprep.subr.bf16.mxu1 %v4414_v16 }
 0x2d2   : > { %v3588_v10 = vpop.f32.mrb[16].mxu0  ;;  %v3599_v11 = vpop.f32.mrb[8].mxu1 }
 0x2d3   : > { %v1253_v13 = vmax.f32 %v3588_v10, %v3599_v11  ;;  %v1165_v14 = vpop.f32.mrb[17].mxu0  ;;  %v1243_v15 = vpop.f32.mrb[9].mxu1  ;;  %v1439_v10 = vld [vmem:[%s5846_s5 + $0x68] sm:$0xff]  ;;  %v1441_v11 = vld [vmem:[%s5846_s5 + $0x78] sm:$0xff] }
 0x2d4   : > { %v1252_v17 = vmax.f32 %v1165_v14, %v1243_v15  ;;  %v3997_v14 = vpack.c.bf16 %v1441_v11, %v1439_v10  ;;  %v1438_v15 = vld [vmem:[%s5846_s5 + $0x60] sm:$0xff]  ;;  %v3322_v11 = vld [vmem:[%s5846_s5 + $0x230] sm:$0xff] }
 0x2da   : > { %v3610_v25 = vpop.f32.mrb[10].mxu1 }
 0x2db   : > { %v1329_v24 = vpop.f32.mrb[11].mxu1 }
 0x2e2   : > { %v3621_v29 = vpop.f32.mrb[12].mxu1 }
 0x2e3   : > { %v1414_v33 = vmax.f32 %v3610_v25, %v3621_v29  ;;  %v1404_v34 = vpop.f32.mrb[13].mxu1  ;;  %v4003_v25 = vpack.c.bf16 %v1444_v23, %v1442_v22  ;;  %v1446_v29 = vld [vmem:[%s5846_s5 + $0xa0] sm:$0xf] }
 0x2e4   : > { %v1413_v36 = vmax.f32 %v1329_v24, %v1404_v34  ;;  %v1447_v24 = vld [vmem:[%s5846_s5 + $0xa8] sm:$0xf]  ;;  %v4007_v34 = vpack.c.bf16 %v3294_v30, %v3292_v28  ;;  %v3334_v30 = vld [vmem:[%s5846_s5 + $0x290] sm:$0xff] }
 0x2e5   : > { %v1416_v40 = vmax.f32 %v1253_v13, %v1414_v33  ;;  %v3995_v13 = vpack.c.bf16 %v1436_v9, %v1434_v8  ;;  %v4005_v33 = vpack.c.bf16 %v3295_v27, %v3293_v26  ;;  %v4025_v8 = vpack.c.bf16 %v3321_v63, %v3319_v62  ;;  %v3335_v26 = vld [vmem:[%s5846_s5 + $0x298] sm:$0xff]  ;;  %v3360_v63 = vld [vmem:[%s5846_s5 + $0x340] sm:$0xff] }
 0x2e6   : > { %v1415_v43 = vmax.f32 %v1252_v17, %v1413_v36  ;;  %v1440_v17 = vld [vmem:[%s5846_s5 + $0x70] sm:$0xff]  ;;  %v3296_v36 = vld [vmem:[%s5846_s5 + $0x180] sm:$0xff] }
 0x2e7   : > { %v5034_v44 = vadd.f32 %v3261_v35, %v1416_v40  ;;  %v3999_v20 = vpack.c.bf16 %v1440_v17, %v1438_v15  ;;  %v4011_v40 = vpack.c.bf16 %v3298_v37, %v3296_v36  ;;  %v3329_v15 = vld [vmem:[%s5846_s5 + $0x268] sm:$0xff]  ;;  %v3346_v36 = vld [vmem:[%s5846_s5 + $0x2d0] sm:$0xff] }
 0x2e8   : > { %v5039_v47 = vadd.f32 %v3261_v35, %v1415_v43  ;;  %v4009_v35 = vpack.c.bf16 %v3299_v32, %v3297_v31  ;;  %v3302_v43 = vld [vmem:[%s5846_s5 + $0x1b0] sm:$0xff]  ;;  %v3336_v31 = vld [vmem:[%s5846_s5 + $0x2a0] sm:$0xff]  ;;  %v3349_v37 = vld [vmem:[%s5846_s5 + $0x2e8] sm:$0xff] }
 0x2e9   : > { %v1474_v52 = vrot.slane %v5034_v44, 1  ;;  %v1675_v53 = vrot.slane %v5034_v44, 2  ;;  %v1793_v54 = vrot.slane %v5034_v44, 3  ;;  %v1910_v55 = vrot.slane %v5034_v44, 4 }
 0x2ea   : > { %v1473_v56 = vrot.slane %v5039_v47, 1  ;;  %v1674_v57 = vrot.slane %v5039_v47, 2  ;;  %v1792_v58 = vrot.slane %v5039_v47, 3  ;;  %v1909_v59 = vrot.slane %v5039_v47, 4 }
 0x2eb   : > { %v4043_v32 = vpack.c.bf16 %v3336_v31, %v3334_v30  ;;  %v3386_v30 = vld [vmem:[%s5847_s6 + $0x110] sm:$0xff]  ;;  %v3387_v31 = vld [vmem:[%s5847_s6 + $0x118] sm:$0xff] }
 0x2ec   : > { %v1475_v0 = vsel %vm517_vm3, %v1473_v56, %v1474_v52  ;;  %v5075_v3 = vsel %vm534_vm0, %v1674_v57, %v1675_v53  ;;  %v5080_v4 = vsel %vm1791_vm10, %v1792_v58, %v1793_v54  ;;  %v5085_v5 = vsel %vm1095_vm7, %v1909_v59, %v1910_v55  ;;  %v3308_v58 = vld [vmem:[%s5846_s5 + $0x1e0] sm:$0xff]  ;;  %v3310_v59 = vld [vmem:[%s5846_s5 + $0x1f0] sm:$0xff] }
 0x2ed   : > { %3286 = vmatmul.mubr.msk.f32.vlgmr.msra.gmra.mrb[18].mxu0 %vm1476_vm9, %v1475_v0  ;;  %v4019_v56 = vpack.c.bf16 %v3306_v50, %v3304_v49  ;;  %v3318_v0 = vld [vmem:[%s5846_s5 + $0x210] sm:$0xff]  ;;  %v3352_v50 = vld [vmem:[%s5846_s5 + $0x300] sm:$0xff]  ;;  %vm2520_vm0 = vcmask 654336  }
 0x2ee   : > { %3988 = vmatpush1.bf16.msra.mxu0 %v3987_v45  ;;  %1557 = vmatprep.mubr.f32.mxu0 %v4413_v12  ;;  %v3305_v45 = vld [vmem:[%s5846_s5 + $0x1c8] sm:$0xff]  ;;  %v4027_v9 = vpack.c.bf16 %v3320_v1, %v3318_v0  ;;  %v3362_v0 = vld [vmem:[%s5846_s5 + $0x350] sm:$0xff] }
 0x2ef   : > { %3990 = vmatprep.subr.bf16.mxu0 %v3989_v60  ;;  %v4017_v48 = vpack.c.bf16 %v3307_v46, %v3305_v45  ;;  %v4023_v60 = vpack.c.bf16 %v3310_v59, %v3308_v58  ;;  %v3350_v45 = vld [vmem:[%s5846_s5 + $0x2f0] sm:$0xff]  ;;  %v3353_v46 = vld [vmem:[%s5846_s5 + $0x308] sm:$0xff]  ;;  %v3356_v58 = vld [vmem:[%s5846_s5 + $0x320] sm:$0xff]  ;;  %v4063_v1 = vpack.c.bf16 %v3362_v0, %v3360_v63 }
 0x2f0   : > { %v3358_v59 = vld [vmem:[%s5846_s5 + $0x330] sm:$0xff]  ;;  %v2517_v63 = vld [vmem:[%s5850_s9 + $0x38] sm:$0xff] }
 0x2f1   : > { %3287 = vmatmul.mubr.msk.f32.gmra.mrb[20].mxu0 %vm1476_vm9, %v1474_v52  ;;  %v3311_v52 = vld [vmem:[%s5846_s5 + $0x1f8] sm:$0xff] }
 0x2f2   : > { %3992 = vmatpush1.bf16.msra.mxu0 %v3991_v6  ;;  %1638 = vmatprep.mubr.f32.mxu0 %v4413_v12  ;;  %v4021_v57 = vpack.c.bf16 %v3311_v52, %v3309_v51  ;;  %v3325_v6 = vld [vmem:[%s5846_s5 + $0x248] sm:$0xff]  ;;  %v3354_v51 = vld [vmem:[%s5846_s5 + $0x310] sm:$0xff] }
 0x2f3   : > { %3994 = vmatprep.subr.bf16.mxu0 %v3993_v7  ;;  %v3312_v7 = vld [vmem:[%s5846_s5 + $0x200] sm:$0xf]  ;;  %v4029_v10 = vpack.c.bf16 %v3325_v6, %v3323_v2  ;;  %v3357_v52 = vld [vmem:[%s5846_s5 + $0x328] sm:$0xff] }
 0x2f4   : > { %v3365_v2 = vld [vmem:[%s5846_s5 + $0x368] sm:$0xf]  ;;  %v3364_v6 = vld [vmem:[%s5846_s5 + $0x360] sm:$0xf] }
 0x2f6   : > { %3996 = vmatpush1.bf16.msra.mxu0 %v3995_v13  ;;  %v3324_v13 = vld [vmem:[%s5846_s5 + $0x240] sm:$0xff] }
 0x2f7   : > { %3998 = vmatprep.subr.bf16.mxu0 %v3997_v14  ;;  %v3327_v14 = vld [vmem:[%s5846_s5 + $0x258] sm:$0xff]  ;;  %v4031_v17 = vpack.c.bf16 %v3324_v13, %v3322_v11  ;;  %v3374_v11 = vld [vmem:[%s5847_s6 + $0xb0] sm:$0xff] }
 0x2f8   : > { %v4033_v18 = vpack.c.bf16 %v3329_v15, %v3327_v14  ;;  %v3376_v15 = vld [vmem:[%s5847_s6 + $0xc0] sm:$0xff] }
 0x2fa   : > { %4000 = vmatpush1.bf16.msra.mxu0 %v3999_v20  ;;  %v3328_v20 = vld [vmem:[%s5846_s5 + $0x260] sm:$0xff] }
 0x2fb   : > { %4002 = vmatprep.subr.bf16.mxu0 %v4001_v21  ;;  %v3331_v21 = vld [vmem:[%s5846_s5 + $0x278] sm:$0xff]  ;;  %v4035_v22 = vpack.c.bf16 %v3328_v20, %v3326_v19  ;;  %v3378_v19 = vld [vmem:[%s5847_s6 + $0xd0] sm:$0xff] }
 0x2fc   : > { %v3379_v20 = vld [vmem:[%s5847_s6 + $0xd8] sm:$0xff] }
 0x2fe   : > { %4004 = vmatpush1.bf16.msra.mxu0 %v4003_v25  ;;  %v3330_v25 = vld [vmem:[%s5846_s5 + $0x270] sm:$0xff] }
 0x2ff   : > { %3288 = vmatprep.subr.msk.mxu0 %vm1095_vm7, %v1447_v24  ;;  %v3332_v24 = vld [vmem:[%s5846_s5 + $0x280] sm:$0xff] }
 0x300   : > { %v4039_v27 = vpack.c.bf16 %v3332_v24, %v3330_v25  ;;  %v3382_v25 = vld [vmem:[%s5847_s6 + $0xf0] sm:$0xff]  ;;  %v3383_v24 = vld [vmem:[%s5847_s6 + $0xf8] sm:$0xff] }
 0x302   : > { %3289 = vmatpush1.msk.msra.mxu0 %vm1095_vm7, %v1446_v29  ;;  %v3339_v29 = vld [vmem:[%s5846_s5 + $0x2b8] sm:$0xf] }
 0x303   : > { %3290 = vmatmul.mubr.msk.f32.vlgmr.msra.gmra.mrb[18].mxu0 %vm1476_vm9, %v5039_v47  ;;  %4006 = vmatprep.subr.bf16.mxu0 %v4005_v33  ;;  %v4015_v47 = vpack.c.bf16 %v3302_v43, %v3300_v42  ;;  %v3345_v33 = vld [vmem:[%s5846_s5 + $0x2c8] sm:$0xff]  ;;  %v4049_v42 = vpack.c.bf16 %v3351_v38, %v3349_v37  ;;  %v3348_v43 = vld [vmem:[%s5846_s5 + $0x2e0] sm:$0xff] }
 0x304   : > { %4008 = vmatpush1.bf16.msra.mxu0 %v4007_v34  ;;  %1644 = vmatprep.mubr.f32.mxu0 %v4413_v12  ;;  %v3347_v34 = vld [vmem:[%s5846_s5 + $0x2d8] sm:$0xff] }
 0x305   : > { %4010 = vmatprep.subr.bf16.mxu0 %v4009_v35  ;;  %v3344_v35 = vld [vmem:[%s5846_s5 + $0x2c0] sm:$0xff] }
 0x307   : > { %3291 = vmatmul.mubr.msk.f32.gmra.mrb[20].mxu0 %vm1476_vm9, %v5034_v44  ;;  %v3375_v44 = vld [vmem:[%s5847_s6 + $0xb8] sm:$0xff] }
 0x308   : > { %4012 = vmatpush1.bf16.msra.mxu0 %v4011_v40  ;;  %1751 = vmatprep.mubr.f32.mxu0 %v4413_v12  ;;  %v4045_v40 = vpack.c.bf16 %v3347_v34, %v3345_v33  ;;  %v4099_v13 = vpack.c.bf16 %v3375_v44, %v3374_v11  ;;  %v3389_v33 = vld [vmem:[%s5847_s6 + $0x128] sm:$0xff]  ;;  %v2938_v44 = vld [vmem:[%s5852_s11 + $0x18] sm:$0xff] }
 0x309   : > { %4014 = vmatprep.subr.bf16.mxu0 %v4013_v41  ;;  %v4047_v41 = vpack.c.bf16 %v3346_v36, %v3344_v35  ;;  %v3390_v35 = vld [vmem:[%s5847_s6 + $0x130] sm:$0xff]  ;;  %v3391_v36 = vld [vmem:[%s5847_s6 + $0x138] sm:$0xff] }
 0x30a   : > { %v4123_v37 = vpack.c.bf16 %v3391_v36, %v3390_v35  ;;  %v3405_v35 = vld [vmem:[%s5850_s9 + $0x50] sm:$0xff]  ;;  %v3406_v36 = vld [vmem:[%s5850_s9 + $0x58] sm:$0xff] }
 0x30c   : > { %4016 = vmatpush1.bf16.msra.mxu0 %v4015_v47  ;;  %v3355_v47 = vld [vmem:[%s5846_s5 + $0x318] sm:$0xff] }
 0x30d   : > { %4018 = vmatprep.subr.bf16.mxu0 %v4017_v48  ;;  %v4051_v48 = vpack.c.bf16 %v3350_v45, %v3348_v43  ;;  %v4053_v49 = vpack.c.bf16 %v3355_v47, %v3353_v46  ;;  %v2201_v45 = vld [vmem:[%s5848_s7] sm:$0x1f] }
 0x310   : > { %4020 = vmatpush1.bf16.msra.mxu0 %v4019_v56  ;;  %v4055_v56 = vpack.c.bf16 %v3354_v51, %v3352_v50  ;;  %v3398_v51 = vld [vmem:[%s5848_s7 + $0x8] sm:$0x1f] }
 0x311   : > { %4022 = vmatprep.subr.bf16.mxu0 %v4021_v57 }
 0x314   : > { %4024 = vmatpush1.bf16.msra.mxu0 %v4023_v60  ;;  %v3361_v60 = vld [vmem:[%s5846_s5 + $0x348] sm:$0xff] }
 0x315   : > { %3314 = vmatprep.subr.msk.mxu0 %vm1095_vm7, %v3313_v61  ;;  %v4059_v61 = vpack.c.bf16 %v3358_v59, %v3356_v58  ;;  %v2513_v58 = vld [vmem:[%s5850_s9 + $0x18] sm:$0xff] }
 0x318   : > { %3315 = vmatpush1.msk.msra.mxu0 %vm1095_vm7, %v3312_v7  ;;  %v3372_v7 = vld [vmem:[%s5847_s6 + $0xa0] sm:$0xff] }
 0x319   : > { %3316 = vmatmul.mubr.msk.f32.vlgmr.msra.gmra.mrb[18].mxu0 %vm1476_vm9, %v5075_v3  ;;  %4026 = vmatprep.subr.bf16.mxu0 %v4025_v8  ;;  %v3333_v3 = vld [vmem:[%s5846_s5 + $0x288] sm:$0xff] }
 0x31a   : > { %4028 = vmatpush1.bf16.msra.mxu0 %v4027_v9  ;;  %1757 = vmatprep.mubr.f32.mxu0 %v4413_v12  ;;  %v4037_v23 = vpack.c.bf16 %v3333_v3, %v3331_v21  ;;  %v3373_v8 = vld [vmem:[%s5847_s6 + $0xa8] sm:$0xff]  ;;  %v4105_v21 = vpack.c.bf16 %v3379_v20, %v3378_v19  ;;  %v3380_v3 = vld [vmem:[%s5847_s6 + $0xe0] sm:$0xff] }
 0x31b   : > { %4030 = vmatprep.subr.bf16.mxu0 %v4029_v10  ;;  %v4096_v10 = vpack.c.bf16 %v3373_v8, %v3372_v7  ;;  %v2943_v20 = vld [vmem:[%s5852_s11 + $0x40] sm:$0xff] }
 0x31d   : > { %3317 = vmatmul.mubr.msk.f32.gmra.mrb[20].mxu0 %vm1476_vm9, %v1675_v53  ;;  %v3337_v53 = vld [vmem:[%s5846_s5 + $0x2a8] sm:$0xff] }
 0x31e   : > { %4032 = vmatpush1.bf16.msra.mxu0 %v4031_v17  ;;  %1869 = vmatprep.mubr.f32.mxu0 %v4413_v12  ;;  %v4041_v28 = vpack.c.bf16 %v3337_v53, %v3335_v26  ;;  %v3377_v17 = vld [vmem:[%s5847_s6 + $0xc8] sm:$0xff]  ;;  %v4111_v26 = vpack.c.bf16 %v3383_v24, %v3382_v25  ;;  %v3384_v53 = vld [vmem:[%s5847_s6 + $0x100] sm:$0xff] }
 0x31f   : > { %4034 = vmatprep.subr.bf16.mxu0 %v4033_v18  ;;  %v4102_v18 = vpack.c.bf16 %v3377_v17, %v3376_v15  ;;  %v2941_v17 = vld [vmem:[%s5852_s11 + $0x30] sm:$0xff]  ;;  %v2947_v24 = vld [vmem:[%s5852_s11 + $0x60] sm:$0xff] }
 0x322   : > { %4036 = vmatpush1.bf16.msra.mxu0 %v4035_v22  ;;  %v3381_v22 = vld [vmem:[%s5847_s6 + $0xe8] sm:$0xff] }
 0x323   : > { %4038 = vmatprep.subr.bf16.mxu0 %v4037_v23  ;;  %v4108_v23 = vpack.c.bf16 %v3381_v22, %v3380_v3  ;;  %v2945_v22 = vld [vmem:[%s5852_s11 + $0x50] sm:$0xff] }
 0x326   : > { %4040 = vmatpush1.bf16.msra.mxu0 %v4039_v27  ;;  %v3385_v27 = vld [vmem:[%s5847_s6 + $0x108] sm:$0xff] }
 0x327   : > { %4042 = vmatprep.subr.bf16.mxu0 %v4041_v28  ;;  %v4114_v28 = vpack.c.bf16 %v3385_v27, %v3384_v53 }
 0x32a   : > { %4044 = vmatpush1.bf16.msra.mxu0 %v4043_v32  ;;  %v4117_v32 = vpack.c.bf16 %v3387_v31, %v3386_v30 }
 0x32b   : > { %3340 = vmatprep.subr.msk.mxu0 %vm1095_vm7, %v3339_v29  ;;  %v3388_v29 = vld [vmem:[%s5847_s6 + $0x120] sm:$0xff] }
 0x32c   : > { %v4120_v34 = vpack.c.bf16 %v3389_v33, %v3388_v29 }
 0x32e   : > { %3341 = vmatpush1.msk.msra.mxu0 %vm1095_vm7, %v3338_v39 }
 0x32f   : > { %3342 = vmatmul.mubr.msk.f32.vlgmr.msra.gmra.mrb[18].mxu0 %vm1476_vm9, %v5080_v4  ;;  %4046 = vmatprep.subr.bf16.mxu0 %v4045_v40  ;;  %v3359_v4 = vld [vmem:[%s5846_s5 + $0x338] sm:$0xff] }
 0x330   : > { %4048 = vmatpush1.bf16.msra.mxu0 %v4047_v41  ;;  %1875 = vmatprep.mubr.f32.mxu0 %v4413_v12  ;;  %v4057_v57 = vpack.c.bf16 %v3359_v4, %v3357_v52  ;;  %v2510_v52 = vld [vmem:[%s5850_s9] sm:$0xff]  ;;  %v2511_v4 = vld [vmem:[%s5850_s9 + $0x8] sm:$0xff] }
 0x331   : > { %4050 = vmatprep.subr.bf16.mxu0 %v4049_v42  ;;  %v3407_v41 = vld [vmem:[%s5850_s9 + $0x60] sm:$0xff] }
 0x333   : > { %3343 = vmatmul.mubr.msk.f32.gmra.mrb[20].mxu0 %vm1476_vm9, %v1793_v54  ;;  %v3363_v54 = vld [vmem:[%s5846_s5 + $0x358] sm:$0xff] }
 0x334   : > { %4052 = vmatpush1.bf16.msra.mxu0 %v4051_v48  ;;  %1986 = vmatprep.mubr.f32.mxu0 %v4413_v12  ;;  %v4061_v62 = vpack.c.bf16 %v3363_v54, %v3361_v60  ;;  %v2514_v60 = vld [vmem:[%s5850_s9 + $0x20] sm:$0xff]  ;;  %v2515_v54 = vld [vmem:[%s5850_s9 + $0x28] sm:$0xff] }
 0x335   : > { %4054 = vmatprep.subr.bf16.mxu0 %v4053_v49 }
 0x338   : > { %4056 = vmatpush1.bf16.msra.mxu0 %v4055_v56  ;;  %v4142_v56 = vpack.c.bf16 %v2511_v4, %v2510_v52  ;;  %v3414_v52 = vld [vmem:[%s5850_s9 + $0x98] sm:$0xff] }
 0x339   : > { %4058 = vmatprep.subr.bf16.mxu0 %v4057_v57  ;;  %v2512_v57 = vld [vmem:[%s5850_s9 + $0x10] sm:$0xff] }
 0x33a   : > { %v4145_v59 = vpack.c.bf16 %v2513_v58, %v2512_v57  ;;  %v3417_v57 = vld [vmem:[%s5850_s9 + $0xa8] sm:$0xff] }
 0x33c   : > { %4060 = vmatpush1.bf16.msra.mxu0 %v4059_v61  ;;  %v4148_v61 = vpack.c.bf16 %v2515_v54, %v2514_v60  ;;  %v3418_v60 = vld [vmem:[%s5850_s9 + $0xb0] sm:$0xff]  ;;  %v3419_v54 = vld [vmem:[%s5850_s9 + $0xb8] sm:$0xff] }
 0x33d   : > { %4062 = vmatprep.subr.bf16.mxu0 %v4061_v62  ;;  %v2516_v62 = vld [vmem:[%s5850_s9 + $0x30] sm:$0xff] }
 0x33e   : > { %v4151_v0 = vpack.c.bf16 %v2517_v63, %v2516_v62  ;;  %v3420_v62 = vld [vmem:[%s5850_s9 + $0xc0] sm:$0xff]  ;;  %v3421_v63 = vld [vmem:[%s5850_s9 + $0xc8] sm:$0xff] }
 0x340   : > { %4064 = vmatpush1.bf16.msra.mxu0 %v4063_v1  ;;  %v2518_v1 = vld [vmem:[%s5850_s9 + $0x40] sm:$0xff] }
 0x341   : > { %3366 = vmatprep.subr.msk.mxu0 %vm1095_vm7, %v3365_v2  ;;  %v2519_v2 = vld [vmem:[%s5850_s9 + $0x48] sm:$0xff] }
 0x344   : > { %3367 = vmatpush1.msk.msra.mxu0 %vm1095_vm7, %v3364_v6  ;;  %v4154_v6 = vpack.c.bf16 %v2519_v2, %v2518_v1  ;;  %v3422_v1 = vld [vmem:[%s5850_s9 + $0xd0] sm:$0xff]  ;;  %v3423_v2 = vld [vmem:[%s5850_s9 + $0xd8] sm:$0xff] }
 0x345   : > { %3368 = vmatmul.mubr.msk.f32.vlgmr.msra.gmra.mrb[18].mxu0 %vm1476_vm9, %v5085_v5  ;;  %4216 = vmatprep.subr.bf16.mxu0 %v4414_v16 }
 0x346   : > { %1992 = vmatprep.mubr.f32.mxu0 %v4413_v12 }
 0x349   : > { %3369 = vmatmul.mubr.msk.f32.gmra.mrb[20].mxu0 %vm1476_vm9, %v1910_v55 }
 0x34a   : > { %3797 = vmatprep.mubr.msk.f32.mxu0 %vm4415_vm12, %v4413_v12 }
 0x418   : > { %v1988_v9 = vpop.f32.mrb[18].mxu0 }
 0x419   : > { %v1990_v5 = vpop.f32.mrb[19].mxu0 }
 0x41a   : > { %3370 = vmatprep.mubr.msk.f32.mxu1 %vm2023_vm11, %v1990_v5 }
 0x41b   : > { %2095 = vmatmul.mubr.f32.vlgmr.msra.gmra.mrb[14].mxu1 %v1988_v9 }
 0x41c   : > { %4097 = vmatpush1.bf16.msra.mxu1 %v4096_v10  ;;  %v1994_v55 = vpop.f32.mrb[20].mxu0  ;;  %v2936_v10 = vld [vmem:[%s5852_s11 + $0x8] sm:$0xff] }
 0x41d   : > { %v1996_v14 = vpop.f32.mrb[21].mxu0  ;;  %4098 = vmatprep.subr.bf16.mxu1 %v4414_v16 }
 0x41e   : > { %3371 = vmatprep.mubr.msk.f32.mxu1 %vm2023_vm11, %v1996_v14 }
 0x41f   : > { %2100 = vmatmul.mubr.f32.gmra.mrb[16].mxu1 %v1994_v55 }
 0x420   : > { %4100 = vmatpush1.bf16.msra.mxu1 %v4099_v13  ;;  %3392 = vmatprep.mubr.msk.f32.mxu1 %vm2023_vm11, %v1990_v5  ;;  %v2937_v5 = vld [vmem:[%s5852_s11 + $0x10] sm:$0xff]  ;;  %v2939_v13 = vld [vmem:[%s5852_s11 + $0x20] sm:$0xff] }
 0x421   : > { %4101 = vmatprep.subr.bf16.mxu1 %v4414_v16 }
 0x424   : > { %4103 = vmatpush1.bf16.msra.mxu1 %v4102_v18  ;;  %v2942_v18 = vld [vmem:[%s5852_s11 + $0x38] sm:$0xff] }
 0x425   : > { %4104 = vmatprep.subr.bf16.mxu1 %v4414_v16  ;;  %v4226_v19 = vpack.c.bf16 %v2942_v18, %v2941_v17  ;;  %v3432_v17 = vld [vmem:[%s5850_s9 + $0x118] sm:$0xff] }
 0x428   : > { %4106 = vmatpush1.bf16.msra.mxu1 %v4105_v21  ;;  %v2944_v21 = vld [vmem:[%s5852_s11 + $0x48] sm:$0xff] }
 0x429   : > { %4107 = vmatprep.subr.bf16.mxu1 %v4414_v16  ;;  %v4229_v3 = vpack.c.bf16 %v2944_v21, %v2943_v20  ;;  %v3434_v20 = vld [vmem:[%s5850_s9 + $0x128] sm:$0xff] }
 0x42c   : > { %4109 = vmatpush1.bf16.msra.mxu1 %v4108_v23  ;;  %v2946_v23 = vld [vmem:[%s5852_s11 + $0x58] sm:$0xff] }
 0x42d   : > { %4110 = vmatprep.subr.bf16.mxu1 %v4414_v16  ;;  %v4232_v25 = vpack.c.bf16 %v2946_v23, %v2945_v22  ;;  %v3436_v22 = vld [vmem:[%s5850_s9 + $0x138] sm:$0xff] }
 0x430   : > { %4112 = vmatpush1.bf16.msra.mxu1 %v4111_v26  ;;  %v2948_v26 = vld [vmem:[%s5852_s11 + $0x68] sm:$0xff] }
 0x431   : > { %4113 = vmatprep.subr.bf16.mxu1 %v4414_v16  ;;  %v4235_v53 = vpack.c.bf16 %v2948_v26, %v2947_v24  ;;  %v3439_v24 = vld [vmem:[%s5850_s9 + $0x148] sm:$0xff] }
 0x434   : > { %4115 = vmatpush1.bf16.msra.mxu1 %v4114_v28 }
 0x435   : > { %4116 = vmatprep.subr.bf16.mxu1 %v4414_v16 }
 0x438   : > { %4118 = vmatpush1.bf16.msra.mxu1 %v4117_v32 }
 0x439   : > { %4119 = vmatprep.subr.bf16.mxu1 %v4414_v16 }
 0x43c   : > { %4121 = vmatpush1.bf16.msra.mxu1 %v4120_v34 }
 0x43d   : > { %4122 = vmatprep.subr.bf16.mxu1 %v4414_v16 }
 0x440   : > { %4124 = vmatpush1.bf16.msra.mxu1 %v4123_v37  ;;  %v3403_v37 = vld [vmem:[%s5849_s8] ss:$0 sm:$0xff] }
 0x441   : > { %4125 = vmatprep.subr.bf16.mxu1 %v4414_v16 }
 0x443   : > { %2191 = vmatmul.mubr.f32.vlgmr.msra.gmra.mrb[18].mxu1 %v1988_v9  ;;  %v2935_v9 = vld [vmem:[%s5852_s11] sm:$0xff] }
 0x444   : > { %3393 = vmatprep.mubr.msk.f32.mxu1 %vm2023_vm11, %v1996_v14  ;;  %v4217_v11 = vpack.c.bf16 %v2936_v10, %v2935_v9  ;;  %v2940_v14 = vld [vmem:[%s5852_s11 + $0x28] sm:$0xff]  ;;  %v3427_v10 = vld [vmem:[%s5850_s9 + $0xf0] sm:$0xff] }
 0x445   : > { %v4223_v15 = vpack.c.bf16 %v2940_v14, %v2939_v13  ;;  %v3430_v13 = vld [vmem:[%s5850_s9 + $0x108] sm:$0xff] }
 0x446   : > { %4218 = vmatpush3.bf16.msra.mxu0 %v4217_v11 }
 0x447   : > { %2196 = vmatmul.mubr.f32.gmra.mrb[20].mxu1 %v1994_v55  ;;  %v4220_v55 = vpack.c.bf16 %v2938_v44, %v2937_v5  ;;  %4219 = vmatprep.subr.bf16.mxu0 %v4414_v16  ;;  %v3428_v5 = vld [vmem:[%s5850_s9 + $0xf8] sm:$0xff] }
 0x448   : > { %3626 = vmatprep.mubr.msk.f32.mxu1 %vm4415_vm12, %v4413_v12  ;;  %v4187_v11 = vpack.c.bf16 %v3428_v5, %v3427_v10  ;;  %v2951_v5 = vld [vmem:[%s5853_s12] sm:$0x1] }
 0x44a   : > { %4221 = vmatpush3.bf16.msra.mxu0 %v4220_v55  ;;  %v3429_v55 = vld [vmem:[%s5850_s9 + $0x100] sm:$0xff] }
 0x44b   : > { %4222 = vmatprep.subr.bf16.mxu0 %v4414_v16  ;;  %v4190_v14 = vpack.c.bf16 %v3430_v13, %v3429_v55 }
 0x44e   : > { %4224 = vmatpush3.bf16.msra.mxu0 %v4223_v15  ;;  %v3431_v15 = vld [vmem:[%s5850_s9 + $0x110] sm:$0xff] }
 0x44f   : > { %4225 = vmatprep.subr.bf16.mxu0 %v4414_v16  ;;  %v4193_v18 = vpack.c.bf16 %v3432_v17, %v3431_v15 }
 0x452   : > { %4227 = vmatpush3.bf16.msra.mxu0 %v4226_v19  ;;  %v3433_v19 = vld [vmem:[%s5850_s9 + $0x120] sm:$0xff] }
 0x453   : > { %4228 = vmatprep.subr.bf16.mxu0 %v4414_v16  ;;  %v4196_v21 = vpack.c.bf16 %v3434_v20, %v3433_v19 }
 0x456   : > { %4230 = vmatpush3.bf16.msra.mxu0 %v4229_v3  ;;  %v3435_v3 = vld [vmem:[%s5850_s9 + $0x130] sm:$0xff] }
 0x457   : > { %4231 = vmatprep.subr.bf16.mxu0 %v4414_v16  ;;  %v4199_v23 = vpack.c.bf16 %v3436_v22, %v3435_v3 }
 0x45a   : > { %4233 = vmatpush3.bf16.msra.mxu0 %v4232_v25  ;;  %v3438_v25 = vld [vmem:[%s5850_s9 + $0x140] sm:$0xff] }
 0x45b   : > { %4234 = vmatprep.subr.bf16.mxu0 %v4414_v16  ;;  %v4202_v26 = vpack.c.bf16 %v3439_v24, %v3438_v25 }
 0x45e   : > { %4236 = vmatpush3.bf16.msra.mxu0 %v4235_v53 }
 0x45f   : > { %4237 = vmatprep.subr.bf16.mxu0 %v4414_v16 }
 0x4ee   : > { %v2096_v38 = vpop.f32.mrb[14].mxu1 }
 0x4ef   : > { %v2098_v39 = vpop.f32.mrb[15].mxu1 }
 0x4f0   : > { %v4157_v39 = vpack.c.bf16 %v3406_v36, %v3405_v35  ;;  %v3446_v36 = vld [vmem:[%s5850_s9 + $0x180] sm:$0xff] }
 0x4f2   : > { %v2101_v40 = vpop.f32.mrb[16].mxu1 }
 0x4f3   : > { %v4126_v42 = vpack.c.bf16 %v2101_v40, %v2096_v38  ;;  %v2103_v43 = vpop.f32.mrb[17].mxu1 }
 0x4f5   : > { %4128 = vmatpush3.bf16.msk.msra.mxu1 %vm5441_vm14, %v4126_v42 }
 0x4f6   : > { %4129 = vmatprep.subr.bf16.mxu1 %v4414_v16 }
 0x4f8   : > { %3627 = vmatmul.mubr.msk.f32.vlgmr.msra.gmra.mrb[22].mxu1 %vm2202_vm15, %v2201_v45 }
 0x4f9   : > { %3633 = vmatprep.mubr.msk.f32.mxu1 %vm4415_vm12, %v4413_v12 }
 0x516   : > { %v2192_v46 = vpop.f32.mrb[18].mxu1 }
 0x517   : > { %v2194_v47 = vpop.f32.mrb[19].mxu1 }
 0x51a   : > { %v2197_v48 = vpop.f32.mrb[20].mxu1 }
 0x51b   : > { %v4130_v49 = vpack.c.bf16 %v2197_v48, %v2192_v46  ;;  %v2199_v50 = vpop.f32.mrb[21].mxu1  ;;  %v3410_v46 = vld [vmem:[%s5850_s9 + $0x78] sm:$0xff]  ;;  %v3411_v48 = vld [vmem:[%s5850_s9 + $0x80] sm:$0xff] }
 0x51d   : > { %4132 = vmatpush3.bf16.msk.msra.mxu1 %vm5441_vm14, %v4130_v49 }
 0x51e   : > { %4133 = vmatprep.subr.bf16.mxu1 %v4414_v16 }
 0x520   : > { %3634 = vmatmul.mubr.msk.f32.vlgmr.msra.gmra.mrb[24].mxu1 %vm2202_vm15, %v2201_v45  ;;  %v3409_v45 = vld [vmem:[%s5850_s9 + $0x70] sm:$0xff] }
 0x521   : > { %4136 = vmatpush3.bf16.msk.msra.mxu1 %vm5441_vm14, %v4126_v42  ;;  %3640 = vmatprep.mubr.msk.f32.mxu1 %vm4415_vm12, %v4413_v12  ;;  %v3408_v42 = vld [vmem:[%s5850_s9 + $0x68] sm:$0xff]  ;;  %v4163_v47 = vpack.c.bf16 %v3410_v46, %v3409_v45  ;;  %v3022_v45 = vld [vmem:[%s5854_s13] sm:$0xff] }
 0x522   : > { %4137 = vmatprep.subr.bf16.mxu1 %v4414_v16  ;;  %v4160_v43 = vpack.c.bf16 %v3408_v42, %v3407_v41  ;;  %v2949_v41 = vld [vmem:[%s5852_s11 + $0x70] sm:$0xff]  ;;  %v2950_v42 = vld [vmem:[%s5852_s11 + $0x78] sm:$0xff]  ;;  %v2509_v46 = vld [vmem:[%s5851_s10] sm:$0x1] }
 0x524   : > { %3641 = vmatmul.mubr.msk.f32.vlgmr.msra.gmra.mrb[26].mxu1 %vm2202_vm15, %v3398_v51 }
 0x525   : > { %4140 = vmatpush3.bf16.msk.msra.mxu1 %vm5441_vm14, %v4130_v49  ;;  %3647 = vmatprep.mubr.msk.f32.mxu1 %vm4415_vm12, %v4413_v12  ;;  %v3412_v49 = vld [vmem:[%s5850_s9 + $0x88] sm:$0xff] }
 0x526   : > { %4141 = vmatprep.subr.bf16.mxu1 %v4414_v16  ;;  %v4166_v50 = vpack.c.bf16 %v3412_v49, %v3411_v48 }
 0x528   : > { %3648 = vmatmul.mubr.msk.f32.vlgmr.msra.gmra.mrb[28].mxu1 %vm2202_vm15, %v3398_v51  ;;  %v3413_v51 = vld [vmem:[%s5850_s9 + $0x90] sm:$0xff] }
 0x529   : > { %4143 = vmatpush3.bf16.msra.mxu1 %v4142_v56  ;;  %3670 = vmatprep.mubr.msk.f32.mxu1 %vm4415_vm12, %v4413_v12  ;;  %v4169_v4 = vpack.c.bf16 %v3414_v52, %v3413_v51  ;;  %v3416_v56 = vld [vmem:[%s5850_s9 + $0xa0] sm:$0xff]  ;;  %v3024_v51 = vld [vmem:[%s5854_s13 + $0x10] sm:$0xff]  ;;  %v3025_v52 = vld [vmem:[%s5854_s13 + $0x18] sm:$0xff] }
 0x52a   : > { %4144 = vmatprep.subr.bf16.mxu1 %v4414_v16  ;;  %v4172_v58 = vpack.c.bf16 %v3417_v57, %v3416_v56  ;;  %v3026_v56 = vld [vmem:[%s5854_s13 + $0x20] sm:$0xff]  ;;  %v3027_v57 = vld [vmem:[%s5854_s13 + $0x28] sm:$0xff] }
 0x52d   : > { %4146 = vmatpush3.bf16.msra.mxu1 %v4145_v59 }
 0x52e   : > { %4147 = vmatprep.subr.bf16.mxu1 %v4414_v16 }
 0x531   : > { %4149 = vmatpush3.bf16.msra.mxu1 %v4148_v61  ;;  %v4175_v61 = vpack.c.bf16 %v3419_v54, %v3418_v60  ;;  %v3030_v54 = vld [vmem:[%s5854_s13 + $0x40] sm:$0xff] }
 0x532   : > { %4150 = vmatprep.subr.bf16.mxu1 %v4414_v16 }
 0x535   : > { %4152 = vmatpush3.bf16.msra.mxu1 %v4151_v0  ;;  %v4178_v0 = vpack.c.bf16 %v3421_v63, %v3420_v62  ;;  %v3032_v63 = vld [vmem:[%s5854_s13 + $0x50] sm:$0xff] }
 0x536   : > { %4153 = vmatprep.subr.bf16.mxu1 %v4414_v16 }
 0x539   : > { %4155 = vmatpush3.bf16.msra.mxu1 %v4154_v6  ;;  %v4181_v6 = vpack.c.bf16 %v3423_v2, %v3422_v1  ;;  %v3034_v2 = vld [vmem:[%s5854_s13 + $0x60] sm:$0xff] }
 0x53a   : > { %4156 = vmatprep.subr.bf16.mxu1 %v4414_v16 }
 0x5cb   : > { %v2276_v7 = vpop.f32.mrb[22].mxu1 }
 0x5cc   : > { %v3628_v8 = vpop.f32.mrb[23].mxu1 }
 0x5cd   : > { %v3425_v8 = vld [vmem:[%s5850_s9 + $0xe8] sm:$0xff] }
 0x5f3   : > { %v2349_v27 = vpop.f32.mrb[24].mxu1 }
 0x5f4   : > { %v2353_v28 = vmax.f32 %v2276_v7, %v2349_v27  ;;  %v3635_v30 = vpop.f32.mrb[25].mxu1  ;;  %v3424_v7 = vld [vmem:[%s5850_s9 + $0xe0] sm:$0xff]  ;;  %v3440_v27 = vld [vmem:[%s5850_s9 + $0x150] sm:$0xff] }
 0x5f5   : > { %v4184_v9 = vpack.c.bf16 %v3425_v8, %v3424_v7  ;;  %v3036_v8 = vld [vmem:[%s5854_s13 + $0x70] sm:$0xff] }
 0x5f7   : > { %v2425_v31 = vpop.f32.mrb[26].mxu1 }
 0x5f8   : > { %v3642_v32 = vpop.f32.mrb[27].mxu1 }
 0x5f9   : > { %v3443_v32 = vld [vmem:[%s5850_s9 + $0x168] sm:$0xff] }
 0x5fb   : > { %v2495_v29 = vpop.f32.mrb[28].mxu1 }
 0x5fc   : > { %v2499_v33 = vmax.f32 %v2425_v31, %v2495_v29  ;;  %v3649_v34 = vpop.f32.mrb[29].mxu1  ;;  %v3442_v31 = vld [vmem:[%s5850_s9 + $0x160] sm:$0xff] }
 0x5fd   : > { %v4208_v29 = vpack.c.bf16 %v3443_v32, %v3442_v31  ;;  %v3445_v34 = vld [vmem:[%s5850_s9 + $0x178] sm:$0xff] }
 0x5fe   : > { %v2500_v38 = vmax.f32 %v2353_v28, %v2499_v33  ;;  %v3441_v28 = vld [vmem:[%s5850_s9 + $0x158] sm:$0xff]  ;;  %v3444_v33 = vld [vmem:[%s5850_s9 + $0x170] sm:$0xff] }
 0x5ff   : > { %v4205_v30 = vpack.c.bf16 %v3441_v28, %v3440_v27  ;;  %v4211_v35 = vpack.c.bf16 %v3445_v34, %v3444_v33 }
 0x600   : > { %v5568_v40 = vadd.f32 %v3403_v37, %v2500_v38  ;;  %v3447_v37 = vld [vmem:[%s5850_s9 + $0x188] sm:$0xff] }
 0x601   : > { %v4214_v38 = vpack.c.bf16 %v3447_v37, %v3446_v36 }
 0x602   : > { %3671 = vmatmul.mubr.msk.f32.vlgmr.msra.gmra.mrb[30].mxu1 %vm2520_vm0, %v5568_v40  ;;  %v2606_v59 = vrot.slane %v5568_v40, 1  ;;  %v2691_v44 = vrot.slane %v5568_v40, 2  ;;  %v2776_v53 = vrot.slane %v5568_v40, 3 }
 0x603   : > { %4158 = vmatpush3.bf16.msra.mxu1 %v4157_v39  ;;  %3693 = vmatprep.mubr.msk.f32.mxu1 %vm4415_vm12, %v4413_v12  ;;  %v2861_v39 = vrot.slane %v5568_v40, 4  ;;  %v3023_v40 = vld [vmem:[%s5854_s13 + $0x8] sm:$0xff] }
 0x604   : > { %4159 = vmatprep.subr.bf16.mxu1 %v4414_v16  ;;  %v4241_v48 = vpack.c.bf16 %v3023_v40, %v3022_v45 }
 0x607   : > { %4161 = vmatpush3.bf16.msra.mxu1 %v4160_v43  ;;  %v4238_v43 = vpack.c.bf16 %v2950_v42, %v2949_v41 }
 0x608   : > { %4162 = vmatprep.subr.bf16.mxu1 %v4414_v16 }
 0x609   : > { %4239 = vmatpush3.bf16.msra.mxu0 %v4238_v43 }
 0x60a   : > { %4240 = vmatprep.subr.bf16.mxu0 %v4414_v16 }
 0x60b   : > { %4164 = vmatpush3.bf16.msra.mxu1 %v4163_v47 }
 0x60c   : > { %4165 = vmatprep.subr.bf16.mxu1 %v4414_v16 }
 0x60f   : > { %4167 = vmatpush3.bf16.msra.mxu1 %v4166_v50 }
 0x610   : > { %4168 = vmatprep.subr.bf16.mxu1 %v4414_v16 }
 0x613   : > { %4170 = vmatpush3.bf16.msra.mxu1 %v4169_v4  ;;  %v4244_v4 = vpack.c.bf16 %v3025_v52, %v3024_v51 }
 0x614   : > { %4171 = vmatprep.subr.bf16.mxu1 %v4414_v16 }
 0x616   : > { %3694 = vmatmul.mubr.msk.f32.vlgmr.msra.gmra.mrb[30].mxu1 %vm2520_vm0, %v2606_v59  ;;  %v3028_v59 = vld [vmem:[%s5854_s13 + $0x30] sm:$0xff] }
 0x617   : > { %4173 = vmatpush3.bf16.msra.mxu1 %v4172_v58  ;;  %3716 = vmatprep.mubr.msk.f32.mxu1 %vm4415_vm12, %v4413_v12  ;;  %v4247_v58 = vpack.c.bf16 %v3027_v57, %v3026_v56 }
 0x618   : > { %4174 = vmatprep.subr.bf16.mxu1 %v4414_v16 }
 0x61b   : > { %4176 = vmatpush3.bf16.msra.mxu1 %v4175_v61  ;;  %v3031_v61 = vld [vmem:[%s5854_s13 + $0x48] sm:$0xff] }
 0x61c   : > { %4177 = vmatprep.subr.bf16.mxu1 %v4414_v16  ;;  %v4253_v62 = vpack.c.bf16 %v3031_v61, %v3030_v54 }
 0x61f   : > { %4179 = vmatpush3.bf16.msra.mxu1 %v4178_v0  ;;  %v3033_v0 = vld [vmem:[%s5854_s13 + $0x58] sm:$0xff] }
 0x620   : > { %4180 = vmatprep.subr.bf16.mxu1 %v4414_v16  ;;  %v4256_v1 = vpack.c.bf16 %v3033_v0, %v3032_v63 }
 0x623   : > { %4182 = vmatpush3.bf16.msra.mxu1 %v4181_v6  ;;  %v3035_v6 = vld [vmem:[%s5854_s13 + $0x68] sm:$0xff] }
 0x624   : > { %4183 = vmatprep.subr.bf16.mxu1 %v4414_v16  ;;  %v4259_v7 = vpack.c.bf16 %v3035_v6, %v3034_v2 }
 0x627   : > { %4185 = vmatpush3.bf16.msra.mxu1 %v4184_v9  ;;  %v3037_v9 = vld [vmem:[%s5854_s13 + $0x78] sm:$0xff] }
 0x628   : > { %4186 = vmatprep.subr.bf16.mxu1 %v4414_v16  ;;  %v4262_v10 = vpack.c.bf16 %v3037_v9, %v3036_v8 }
 0x62a   : > { %3717 = vmatmul.mubr.msk.f32.vlgmr.msra.gmra.mrb[30].mxu1 %vm2520_vm0, %v2691_v44 }
 0x62b   : > { %4188 = vmatpush3.bf16.msra.mxu1 %v4187_v11  ;;  %3739 = vmatprep.mubr.msk.f32.mxu1 %vm4415_vm12, %v4413_v12 }
 0x62c   : > { %4189 = vmatprep.subr.bf16.mxu1 %v4414_v16 }
 0x62f   : > { %4191 = vmatpush3.bf16.msra.mxu1 %v4190_v14 }
 0x630   : > { %4192 = vmatprep.subr.bf16.mxu1 %v4414_v16 }
 0x633   : > { %4194 = vmatpush3.bf16.msra.mxu1 %v4193_v18 }
 0x634   : > { %4195 = vmatprep.subr.bf16.mxu1 %v4414_v16 }
 0x637   : > { %4197 = vmatpush3.bf16.msra.mxu1 %v4196_v21 }
 0x638   : > { %4198 = vmatprep.subr.bf16.mxu1 %v4414_v16 }
 0x63b   : > { %4200 = vmatpush3.bf16.msra.mxu1 %v4199_v23 }
 0x63c   : > { %4201 = vmatprep.subr.bf16.mxu1 %v4414_v16 }
 0x63e   : > { %3740 = vmatmul.mubr.msk.f32.vlgmr.msra.gmra.mrb[30].mxu1 %vm2520_vm0, %v2776_v53 }
 0x63f   : > { %4203 = vmatpush3.bf16.msra.mxu1 %v4202_v26  ;;  %3762 = vmatprep.mubr.msk.f32.mxu1 %vm4415_vm12, %v4413_v12 }
 0x640   : > { %4204 = vmatprep.subr.bf16.mxu1 %v4414_v16 }
 0x643   : > { %4206 = vmatpush3.bf16.msra.mxu1 %v4205_v30 }
 0x644   : > { %4207 = vmatprep.subr.bf16.mxu1 %v4414_v16 }
 0x647   : > { %4209 = vmatpush3.bf16.msra.mxu1 %v4208_v29 }
 0x648   : > { %4210 = vmatprep.subr.bf16.mxu1 %v4414_v16 }
 0x64b   : > { %4212 = vmatpush3.bf16.msra.mxu1 %v4211_v35 }
 0x64c   : > { %4213 = vmatprep.subr.bf16.mxu1 %v4414_v16 }
 0x64f   : > { %4215 = vmatpush3.bf16.msra.mxu1 %v4214_v38 }
 0x652   : > { %3763 = vmatmul.mubr.msk.f32.vlgmr.msra.gmra.mrb[30].mxu1 %vm2520_vm0, %v2861_v39 }
 0x725   : > { %v2930_v47 = vpop.f32.mrb[30].mxu1 }
 0x726   : > { %v4264_v49 = vadd.f32 %v2930_v47, %v2509_v46  ;;  %v3764_v50 = vpop.f32.mrb[31].mxu1 }
 0x728   : > { %3798 = vmatmul.mubr.f32.vlgmr.msra.gmra.mrb[22].mxu0 %v4264_v49 }
 0x729   : > { %4242 = vmatpush3.bf16.msra.mxu0 %v4241_v48  ;;  %3832 = vmatprep.mubr.msk.f32.mxu0 %vm4415_vm12, %v4413_v12  ;;  %v3029_v12 = vld [vmem:[%s5854_s13 + $0x38] sm:$0xff] }
 0x72a   : > { %4243 = vmatprep.subr.bf16.mxu0 %v4414_v16  ;;  %v4250_v60 = vpack.c.bf16 %v3029_v12, %v3028_v59 }
 0x72d   : > { %4245 = vmatpush3.bf16.msra.mxu0 %v4244_v4 }
 0x72e   : > { %4246 = vmatprep.subr.bf16.mxu0 %v4414_v16 }
 0x731   : > { %4248 = vmatpush3.bf16.msra.mxu0 %v4247_v58 }
 0x732   : > { %4249 = vmatprep.subr.bf16.mxu0 %v4414_v16 }
 0x735   : > { %4251 = vmatpush3.bf16.msra.mxu0 %v4250_v60 }
 0x736   : > { %4252 = vmatprep.subr.bf16.mxu0 %v4414_v16 }
 0x739   : > { %4254 = vmatpush3.bf16.msra.mxu0 %v4253_v62 }
 0x73a   : > { %4255 = vmatprep.subr.bf16.mxu0 %v4414_v16 }
 0x73d   : > { %4257 = vmatpush3.bf16.msra.mxu0 %v4256_v1 }
 0x73e   : > { %4258 = vmatprep.subr.bf16.mxu0 %v4414_v16 }
 0x741   : > { %4260 = vmatpush3.bf16.msra.mxu0 %v4259_v7 }
 0x742   : > { %4261 = vmatprep.subr.bf16.mxu0 %v4414_v16  ;;  %v3038_v16 = vld [vmem:[%s5855_s14] sm:$0x1] }
 0x745   : > { %4263 = vmatpush3.bf16.msra.mxu0 %v4262_v10 }
 0x7fb   : > { %v3018_v11 = vpop.f32.mrb[22].mxu0 }
 0x7fc   : > { %v3019_v44 = vadd.f32 %v3018_v11, %v2951_v5  ;;  %v3799_v55 = vpop.f32.mrb[23].mxu0 }
 0x7fe   : > { %3833 = vmatmul.mubr.f32.vlgmr.msra.gmra.mrb[24].mxu0 %v3019_v44 }
 0x8d1   : > { %v3105_v13 = vpop.f32.mrb[24].mxu0 }
 0x8d2   : > { %v3106_v14 = vadd.f32 %v3105_v13, %v3038_v16  ;;  %v3834_v15 = vpop.f32.mrb[25].mxu0 }
 0x8d4   : > { %3109 = vst [vmem:[%s486_s24] sm:$0x1] %v3106_v14 }
 0x8d5   : > { %4361 = shalt.err (!%p4358_p3)
}
 0x8d6   : > { %s4362_s17 = scalar_lea.hbm %s5799_s30, 16  ;;  %s4366_s24 = scalar_lea.hbm %s5879_s26, 32 }
 0x8d7   : > { %p4363_p4 = scmp.ne.s32.totalorder %s5799_s30, %s4362_s17  ;;  %p4367_p9 = scmp.lt.u32.totalorder %s5799_s30, %s5879_s26 }
 0x8d8   : > { %p4368_p10 = scmp.lt.u32.totalorder %s4366_s24, %s4362_s17  ;;  %p4370_p12 = scmp.lt.u32.totalorder %s4362_s17, %s5799_s30 }
 0x8d9   : > { %p4364_p7 = pnand %p4363_p4, %p4535_p5 }
 0x8da   : > { %p4369_p11 = por %p4368_p10, %p4367_p9 }
 0x8db   : > { %p4365_p8 = pneg %p4364_p7 }
 0x8dc   : > { %p4371_p13 = por %p4370_p12, %p4369_p11 }
 0x8de   : > { %p4372_p0 = pnand %p4371_p13, %p4365_p8 }
 0x8e0   : > { %4375 = shalt.err (!%p4372_p0)
}
 0x8e1   : > { %4305 = dma.vmem_to_hbm [thread:$0]  (%p4535_p5), %s5801_s29, 16, %s5799_s30, %s3111_s15  }
 0x8e2 PF: > { %s5880_s18 = sld [smem:[#allocation7_spill]]  ;;  %s5881_s22 = sld [smem:[#allocation5_spill]] }
 0x8e8   : > { %p4311_p1 = scmp.ge.s32.totalorder %s5880_s18, 2  ;;  %s3135_s16 = sand.u32 1, %s5881_s22  }
 0x8e9   : > { %s3136_s20 = scalar_lea.sflag [#allocation3], %s3135_s16 }
 0x8ea   : > { %p4308_p2 = pnand %p4311_p1, %p4539_p6 }
 0x8ec   : > { %4393 = dma.done.wait (!%p4308_p2), %s3136_s20, 16  }
 0x8ed   : > { %4395 = vsyncadd (!%p4308_p2), %s3136_s20, 4294967280  ;;  %s5883_s21 = sld [smem:[#allocation8_spill]]  ;;  %s5884_s17 = sld [smem:[#allocation6_spill]] }
 0x8ee   : > { %s5885_s20 = sld [smem:[#allocation9_spill]]  ;;  %s5886_s18 = smov %s4402_s19 }
 0x8f3   : > { %p25_p3 = scmp.ge.s32.totalorder %s5883_s21, 4   ;;  %s5887_s19 = smov %s5884_s17 }
 0x8f5   :  { %27 = sbr.rel (!%p25_p3) target bundleno = 5 (0x5), region = 129 }
 0x8fc   :  { %3140 = vsyncpa [#allocation3], 1 }
 0x8fd   :  { %3142 = vsyncpa [#allocation3 + $0x1], 1 }

</bundles_post_ra>
